<compile_context>
chip_gen: v7x
topology: tpu7x:2x2x1
jax: 0.10.0
libtpu: 0.0.40
codegen_flags: <defaults>
</compile_context>

<pallas_src>
import math

import jax
import jax.numpy as jnp
from jax.experimental import pallas as pl
from jax.experimental.pallas import tpu as pltpu


def _round_up(x, m):
    return ((x + m - 1) // m) * m


def _pick_tile(dim, candidates):
    for c in candidates:
        if dim % c == 0:
            return c
    return dim  # full-extent block (always legal for any size)


# ----------------------------------------------------------------------------
# Fused Pallas kernel: O = act(A @ B + bias) with per-column (output channel)
# bias and PReLU slope alpha.  A, B are bf16; accumulation is f32 on the MXU.
# ----------------------------------------------------------------------------
def _mm_kernel(a_ref, b_ref, bias_ref, alpha_ref, o_ref, acc_ref):
    @pl.when(pl.program_id(2) == 0)
    def _():
        acc_ref[...] = jnp.zeros_like(acc_ref)

    acc_ref[...] += jnp.dot(a_ref[...], b_ref[...],
                            preferred_element_type=jnp.float32)

    @pl.when(pl.program_id(2) == pl.num_programs(2) - 1)
    def _():
        y = acc_ref[...] + bias_ref[...]
        o_ref[...] = jnp.where(y > 0, y, alpha_ref[...] * y).astype(o_ref.dtype)


def fused_matmul(A, B, bias, alpha, n_out, out_dtype=jnp.bfloat16):
    """act(A @ B + bias)[:, :n_out].  B/bias/alpha are pre-padded to 128-mults."""
    M, K = A.shape
    Kp, Np = B.shape
    # bf16 operands need >=16 sublanes; pad M only on the remainder.
    Mp = _round_up(M, 16) if M <= 1024 else _round_up(M, 128)
    A = A.astype(jnp.bfloat16)
    if Mp != M or Kp != K:
        A = jnp.pad(A, ((0, Mp - M), (0, Kp - K)))

    tm = _pick_tile(Mp, (256, 128))
    tn = _pick_tile(Np, (512, 256, 128))
    tk = _pick_tile(Kp, (512, 256, 128))
    grid = (Mp // tm, Np // tn, Kp // tk)

    out = pl.pallas_call(
        _mm_kernel,
        out_shape=jax.ShapeDtypeStruct((Mp, Np), out_dtype),
        grid_spec=pltpu.PrefetchScalarGridSpec(
            num_scalar_prefetch=0,
            grid=grid,
            in_specs=[
                pl.BlockSpec((tm, tk), lambda i, j, k: (i, k)),
                pl.BlockSpec((tk, tn), lambda i, j, k: (k, j)),
                pl.BlockSpec((1, tn), lambda i, j, k: (0, j)),
                pl.BlockSpec((1, tn), lambda i, j, k: (0, j)),
            ],
            out_specs=pl.BlockSpec((tm, tn), lambda i, j, k: (i, j)),
            scratch_shapes=[pltpu.VMEM((tm, tn), jnp.float32)],
        ),
        compiler_params=pltpu.CompilerParams(
            dimension_semantics=("parallel", "parallel", "arbitrary")),
    )(A, B, bias, alpha)
    return out[:M, :n_out]


# ----------------------------------------------------------------------------
# Weight packing (done once, at init)
# ----------------------------------------------------------------------------
def _pack_weight(w):                      # (K, N) f32 -> (Kp, Np) bf16
    K, N = w.shape
    return jnp.pad(w, ((0, _round_up(K, 128) - K),
                       (0, _round_up(N, 128) - N))).astype(jnp.bfloat16)


def _pack_vec(v, n):                      # (n,) -> (1, Np) f32
    return jnp.pad(v.astype(jnp.float32),
                   (0, _round_up(n, 128) - n)).reshape(1, -1)


class KeyGen:
    def __init__(self, seed):
        self.key = jax.random.PRNGKey(seed)

    def __call__(self):
        self.key, sub = jax.random.split(self.key)
        return sub


def init_conv2d(kg, oc, ic, k, act='prelu'):
    fan_in = ic * k * k
    w = jax.random.normal(kg(), (oc, ic, k, k), jnp.float32) / math.sqrt(fan_in)
    # im2col weight matrix, rows ordered (kh, kw, ic) to match the patch layout
    wmat = jnp.transpose(w, (2, 3, 1, 0)).reshape(k * k * ic, oc)
    alpha = {'prelu': 0.25, 'relu': 0.0, 'linear': 1.0}[act]
    return {'B': _pack_weight(wmat),
            'bias': _pack_vec(jnp.zeros((oc,), jnp.float32), oc),
            'alpha': _pack_vec(jnp.full((oc,), alpha, jnp.float32), oc)}


def init_cbam(kg, c, r=16):
    cr = max(1, c // r)
    w1 = jax.random.normal(kg(), (c, cr), jnp.float32) / math.sqrt(c)
    w2 = jax.random.normal(kg(), (cr, c), jnp.float32) / math.sqrt(cr)
    return {
        'w1': _pack_weight(w1), 'b1': _pack_vec(jnp.zeros((cr,)), cr),
        'a1': _pack_vec(jnp.zeros((cr,)), cr),            # ReLU   (alpha = 0)
        'w2': _pack_weight(w2), 'b2': _pack_vec(jnp.zeros((c,)), c),
        'a2': _pack_vec(jnp.ones((c,)), c),               # identity (alpha = 1)
        'spatial': init_conv2d(kg, 1, 2, 7, act='linear'),
    }


# ----------------------------------------------------------------------------
# Conv / CBAM built on the fused Pallas matmul (NHWC activations, bf16)
# ----------------------------------------------------------------------------
def conv2d_nhwc(x, p, *, k, oc, stride=1, padding=1, out_dtype=jnp.bfloat16):
    """x: (N, H, W, C) bf16.  Conv2d + bias + PReLU in one fused Pallas call."""
    N, H, W, C = x.shape
    xp = jnp.pad(x, ((0, 0), (padding, padding), (padding, padding), (0, 0)))
    OH = (H + 2 * padding - k) // stride + 1
    OW = (W + 2 * padding - k) // stride + 1
    # TODO(synk): overlapping/strided conv windows cannot be expressed by a
    # Pallas BlockSpec index_map, so patch extraction stays XLA glue (NHWC
    # channel-concat => the reshape below is layout-free, no transposes).
    cols = [xp[:, ki:ki + stride * OH:stride, kj:kj + stride * OW:stride, :]
            for ki in range(k) for kj in range(k)]
    A = jnp.concatenate(cols, axis=-1).reshape(N * OH * OW, k * k * C)
    out = fused_matmul(A, p['B'], p['bias'], p['alpha'], oc, out_dtype)
    return out.reshape(N, OH, OW, oc)


def cbam_forward(p, x, *, c, cr):
    """Standard CBAM; BatchNorm in the spatial gate treated as identity."""
    N, H, W, C = x.shape
    xf = x.astype(jnp.float32)
    # channel attention: avg- and max-pool batched into one (2N, C) MLP pass
    pooled = jnp.concatenate([jnp.mean(xf, axis=(1, 2)),
                              jnp.max(xf, axis=(1, 2))], axis=0)       # (2N, C)
    h = fused_matmul(pooled, p['w1'], p['b1'], p['a1'], cr)            # ReLU
    z = fused_matmul(h, p['w2'], p['b2'], p['a2'], c,
                     out_dtype=jnp.float32)                            # identity
    scale = jax.nn.sigmoid(z[:N] + z[N:])                              # (N, C)
    x = (xf * scale[:, None, None, :]).astype(jnp.bfloat16)

    # spatial attention: [max, mean] over channels -> 7x7 conv -> sigmoid
    comp = jnp.concatenate(
        [jnp.max(x, axis=3, keepdims=True),
         jnp.mean(x.astype(jnp.float32), axis=3, keepdims=True).astype(jnp.bfloat16)],
        axis=3)                                                        # (N,H,W,2)
    att = conv2d_nhwc(comp, p['spatial'], k=7, oc=1, stride=1, padding=3,
                      out_dtype=jnp.float32)                           # (N,H,W,1)
    return (x.astype(jnp.float32) * jax.nn.sigmoid(att)).astype(jnp.bfloat16)


# ----------------------------------------------------------------------------
# UNetConv module: conv(3x3, s=2) + PReLU -> conv(3x3, s=1) + PReLU -> [CBAM]
# ----------------------------------------------------------------------------
def make_unetconv(in_planes, out_planes, att=True, seed=0):
    kg = KeyGen(seed)
    params = {'conv1': init_conv2d(kg, out_planes, in_planes, 3),
              'conv2': init_conv2d(kg, out_planes, out_planes, 3)}
    if att:
        params['cbam'] = init_cbam(kg, out_planes, r=16)
    cr = max(1, out_planes // 16)

    def forward(p, x):
        # Module boundary keeps the PyTorch NCHW convention; internal NHWC/bf16.
        x = jnp.transpose(x, (0, 2, 3, 1)).astype(jnp.bfloat16)
        x = conv2d_nhwc(x, p['conv1'], k=3, oc=out_planes, stride=2, padding=1)
        x = conv2d_nhwc(x, p['conv2'], k=3, oc=out_planes, stride=1, padding=1)
        if att:
            x = cbam_forward(p['cbam'], x, c=out_planes, cr=cr)
        return jnp.transpose(x, (0, 3, 1, 2)).astype(jnp.float32)

    return params, jax.jit(forward)


# ----------------------------------------------------------------------------
if __name__ == "__main__":
    params, unetconv = make_unetconv(in_planes=4, out_planes=32, att=True, seed=0)
    x = jax.random.uniform(jax.random.PRNGKey(0), (2, 4, 16, 16), jnp.float32)

    out = jax.block_until_ready(unetconv(params, x))

    assert out.shape == (2, 32, 8, 8), out.shape
    assert bool(jnp.isfinite(out).all())
    print("KERNEL_OK")
</pallas_src>

<mosaic_0001>
module attributes {stable_mosaic.version = 11 : i64} {
  func.func @_mm_kernel(%arg0: i32, %arg1: i32, %arg2: i32, %arg3: memref<128x128xbf16, #tpu.memory_space<vmem>>, %arg4: memref<128x128xbf16, #tpu.memory_space<vmem>>, %arg5: memref<1x128xf32, #tpu.memory_space<vmem>>, %arg6: memref<1x128xf32, #tpu.memory_space<vmem>>, %arg7: memref<128x128xbf16, #tpu.memory_space<vmem>>, %arg8: memref<128x128xf32, #tpu.memory_space<vmem>>) attributes {dimension_semantics = [#tpu.dimension_semantics<parallel>, #tpu.dimension_semantics<parallel>, #tpu.dimension_semantics<arbitrary>], iteration_bounds = array<i64: 1, 1, 1>, scalar_prefetch = 0 : i64, scratch_operands = 1 : i64, tpu.core_type = #tpu.core_type<tc>, window_params = [{transform_indices = @transform_0, window_bounds = array<i64: 128, 128>}, {transform_indices = @transform_1, window_bounds = array<i64: 128, 128>}, {transform_indices = @transform_2, window_bounds = array<i64: 1, 128>}, {transform_indices = @transform_3, window_bounds = array<i64: 1, 128>}, {transform_indices = @transform_4, window_bounds = array<i64: 128, 128>}]} {
    %c0_i32 = arith.constant 0 : i32
    %0 = arith.cmpi eq, %arg2, %c0_i32 : i32
    %1 = arith.extui %0 : i1 to i32
    %c0_i32_0 = arith.constant 0 : i32
    %2 = arith.cmpi ne, %1, %c0_i32_0 : i32
    scf.if %2 {
      %cst_10 = arith.constant 0.000000e+00 : f32
      %12 = vector.broadcast %cst_10 : f32 to vector<128x128xf32>
      %c0_11 = arith.constant 0 : index
      %c0_12 = arith.constant 0 : index
      %13 = vector.load %arg8[%c0_11, %c0_12] : memref<128x128xf32, #tpu.memory_space<vmem>>, vector<128x128xf32>
      tpu.vector_store %arg8[%c0_11, %c0_12], %12 {strides = array<i32>} : memref<128x128xf32, #tpu.memory_space<vmem>>, vector<128x128xf32>,
    } else {
    }
    %c0 = arith.constant 0 : index
    %c0_1 = arith.constant 0 : index
    %3 = vector.load %arg8[%c0, %c0_1] : memref<128x128xf32, #tpu.memory_space<vmem>>, vector<128x128xf32>
    %c0_2 = arith.constant 0 : index
    %c0_3 = arith.constant 0 : index
    %4 = vector.load %arg3[%c0_2, %c0_3] : memref<128x128xbf16, #tpu.memory_space<vmem>>, vector<128x128xbf16>
    %c0_4 = arith.constant 0 : index
    %c0_5 = arith.constant 0 : index
    %5 = vector.load %arg4[%c0_4, %c0_5] : memref<128x128xbf16, #tpu.memory_space<vmem>>, vector<128x128xbf16>
    %cst = arith.constant dense<0.000000e+00> : vector<128x128xf32>
    %6 = tpu.matmul %4, %5, %cst {dimension_numbers = #tpu.dot_dimension_numbers<[1], [0], [0], [1], [0, 0, 1, 1], [], []>} : vector<128x128xbf16>, vector<128x128xbf16>, vector<128x128xf32> -> vector<128x128xf32>
    %7 = arith.addf %3, %6 : vector<128x128xf32>
    %c0_6 = arith.constant 0 : index
    %c0_7 = arith.constant 0 : index
    %8 = vector.load %arg8[%c0_6, %c0_7] : memref<128x128xf32, #tpu.memory_space<vmem>>, vector<128x128xf32>
    tpu.vector_store %arg8[%c0_6, %c0_7], %7 {strides = array<i32>} : memref<128x128xf32, #tpu.memory_space<vmem>>, vector<128x128xf32>,
    %c0_i32_8 = arith.constant 0 : i32
    %9 = arith.cmpi eq, %arg2, %c0_i32_8 : i32
    %10 = arith.extui %9 : i1 to i32
    %c0_i32_9 = arith.constant 0 : i32
    %11 = arith.cmpi ne, %10, %c0_i32_9 : i32
    scf.if %11 {
      %c0_10 = arith.constant 0 : index
      %c0_11 = arith.constant 0 : index
      %12 = vector.load %arg8[%c0_10, %c0_11] : memref<128x128xf32, #tpu.memory_space<vmem>>, vector<128x128xf32>
      %c0_12 = arith.constant 0 : index
      %c0_13 = arith.constant 0 : index
      %13 = vector.load %arg5[%c0_12, %c0_13] : memref<1x128xf32, #tpu.memory_space<vmem>>, vector<1x128xf32>
      %14 = vector.broadcast %13 : vector<1x128xf32> to vector<128x128xf32>
      %15 = arith.addf %12, %14 : vector<128x128xf32>
      %cst_14 = arith.constant 0.000000e+00 : f32
      %16 = vector.broadcast %cst_14 : f32 to vector<128x128xf32>
      %17 = arith.cmpf ogt, %15, %16 : vector<128x128xf32>
      %c0_15 = arith.constant 0 : index
      %c0_16 = arith.constant 0 : index
      %18 = vector.load %arg6[%c0_15, %c0_16] : memref<1x128xf32, #tpu.memory_space<vmem>>, vector<1x128xf32>
      %19 = vector.broadcast %18 : vector<1x128xf32> to vector<128x128xf32>
      %20 = arith.mulf %19, %15 : vector<128x128xf32>
      %21 = arith.select %17, %15, %20 : vector<128x128xi1>, vector<128x128xf32>
      %22 = arith.truncf %21 : vector<128x128xf32> to vector<128x128xbf16>
      %c0_17 = arith.constant 0 : index
      %c0_18 = arith.constant 0 : index
      %23 = vector.load %arg7[%c0_17, %c0_18] : memref<128x128xbf16, #tpu.memory_space<vmem>>, vector<128x128xbf16>
      tpu.vector_store %arg7[%c0_17, %c0_18], %22 {strides = array<i32>} : memref<128x128xbf16, #tpu.memory_space<vmem>>, vector<128x128xbf16>,
    } else {
    }
    return
  }
  func.func @transform_0(%arg0: i32, %arg1: i32, %arg2: i32) -> (i32, i32) {
    %c0_i32 = arith.constant 0 : i32
    return %arg0, %arg2 : i32, i32
  }
  func.func @transform_1(%arg0: i32, %arg1: i32, %arg2: i32) -> (i32, i32) {
    %c0_i32 = arith.constant 0 : i32
    return %arg2, %arg1 : i32, i32
  }
  func.func @transform_2(%arg0: i32, %arg1: i32, %arg2: i32) -> (i32, i32) {
    %c0_i32 = arith.constant 0 : i32
    %c0_i32_0 = arith.constant 0 : i32
    return %c0_i32, %arg1 : i32, i32
  }
  func.func @transform_3(%arg0: i32, %arg1: i32, %arg2: i32) -> (i32, i32) {
    %c0_i32 = arith.constant 0 : i32
    %c0_i32_0 = arith.constant 0 : i32
    return %c0_i32, %arg1 : i32, i32
  }
  func.func @transform_4(%arg0: i32, %arg1: i32, %arg2: i32) -> (i32, i32) {
    %c0_i32 = arith.constant 0 : i32
    return %arg0, %arg1 : i32, i32
  }
}

module attributes {stable_mosaic.version = 11 : i64} {
  func.func @_mm_kernel(%arg0: i32, %arg1: i32, %arg2: i32, %arg3: memref<128x128xbf16, #tpu.memory_space<vmem>>, %arg4: memref<128x128xbf16, #tpu.memory_space<vmem>>, %arg5: memref<1x128xf32, #tpu.memory_space<vmem>>, %arg6: memref<1x128xf32, #tpu.memory_space<vmem>>, %arg7: memref<128x128xbf16, #tpu.memory_space<vmem>>, %arg8: memref<128x128xf32, #tpu.memory_space<vmem>>) attributes {dimension_semantics = [#tpu.dimension_semantics<parallel>, #tpu.dimension_semantics<parallel>, #tpu.dimension_semantics<arbitrary>], iteration_bounds = array<i64: 1, 1, 3>, scalar_prefetch = 0 : i64, scratch_operands = 1 : i64, tpu.core_type = #tpu.core_type<tc>, window_params = [{transform_indices = @transform_0, window_bounds = array<i64: 128, 128>}, {transform_indices = @transform_1, window_bounds = array<i64: 128, 128>}, {transform_indices = @transform_2, window_bounds = array<i64: 1, 128>}, {transform_indices = @transform_3, window_bounds = array<i64: 1, 128>}, {transform_indices = @transform_4, window_bounds = array<i64: 128, 128>}]} {
    %c0_i32 = arith.constant 0 : i32
    %0 = arith.cmpi eq, %arg2, %c0_i32 : i32
    %1 = arith.extui %0 : i1 to i32
    %c0_i32_0 = arith.constant 0 : i32
    %2 = arith.cmpi ne, %1, %c0_i32_0 : i32
    scf.if %2 {
      %cst_9 = arith.constant 0.000000e+00 : f32
      %12 = vector.broadcast %cst_9 : f32 to vector<128x128xf32>
      %c0_10 = arith.constant 0 : index
      %c0_11 = arith.constant 0 : index
      %13 = vector.load %arg8[%c0_10, %c0_11] : memref<128x128xf32, #tpu.memory_space<vmem>>, vector<128x128xf32>
      tpu.vector_store %arg8[%c0_10, %c0_11], %12 {strides = array<i32>} : memref<128x128xf32, #tpu.memory_space<vmem>>, vector<128x128xf32>,
    } else {
    }
    %c0 = arith.constant 0 : index
    %c0_1 = arith.constant 0 : index
    %3 = vector.load %arg8[%c0, %c0_1] : memref<128x128xf32, #tpu.memory_space<vmem>>, vector<128x128xf32>
    %c0_2 = arith.constant 0 : index
    %c0_3 = arith.constant 0 : index
    %4 = vector.load %arg3[%c0_2, %c0_3] : memref<128x128xbf16, #tpu.memory_space<vmem>>, vector<128x128xbf16>
    %c0_4 = arith.constant 0 : index
    %c0_5 = arith.constant 0 : index
    %5 = vector.load %arg4[%c0_4, %c0_5] : memref<128x128xbf16, #tpu.memory_space<vmem>>, vector<128x128xbf16>
    %cst = arith.constant dense<0.000000e+00> : vector<128x128xf32>
    %6 = tpu.matmul %4, %5, %cst {dimension_numbers = #tpu.dot_dimension_numbers<[1], [0], [0], [1], [0, 0, 1, 1], [], []>} : vector<128x128xbf16>, vector<128x128xbf16>, vector<128x128xf32> -> vector<128x128xf32>
    %7 = arith.addf %3, %6 : vector<128x128xf32>
    %c0_6 = arith.constant 0 : index
    %c0_7 = arith.constant 0 : index
    %8 = vector.load %arg8[%c0_6, %c0_7] : memref<128x128xf32, #tpu.memory_space<vmem>>, vector<128x128xf32>
    tpu.vector_store %arg8[%c0_6, %c0_7], %7 {strides = array<i32>} : memref<128x128xf32, #tpu.memory_space<vmem>>, vector<128x128xf32>,
    %c2_i32 = arith.constant 2 : i32
    %9 = arith.cmpi eq, %arg2, %c2_i32 : i32
    %10 = arith.extui %9 : i1 to i32
    %c0_i32_8 = arith.constant 0 : i32
    %11 = arith.cmpi ne, %10, %c0_i32_8 : i32
    scf.if %11 {
      %c0_9 = arith.constant 0 : index
      %c0_10 = arith.constant 0 : index
      %12 = vector.load %arg8[%c0_9, %c0_10] : memref<128x128xf32, #tpu.memory_space<vmem>>, vector<128x128xf32>
      %c0_11 = arith.constant 0 : index
      %c0_12 = arith.constant 0 : index
      %13 = vector.load %arg5[%c0_11, %c0_12] : memref<1x128xf32, #tpu.memory_space<vmem>>, vector<1x128xf32>
      %14 = vector.broadcast %13 : vector<1x128xf32> to vector<128x128xf32>
      %15 = arith.addf %12, %14 : vector<128x128xf32>
      %cst_13 = arith.constant 0.000000e+00 : f32
      %16 = vector.broadcast %cst_13 : f32 to vector<128x128xf32>
      %17 = arith.cmpf ogt, %15, %16 : vector<128x128xf32>
      %c0_14 = arith.constant 0 : index
      %c0_15 = arith.constant 0 : index
      %18 = vector.load %arg6[%c0_14, %c0_15] : memref<1x128xf32, #tpu.memory_space<vmem>>, vector<1x128xf32>
      %19 = vector.broadcast %18 : vector<1x128xf32> to vector<128x128xf32>
      %20 = arith.mulf %19, %15 : vector<128x128xf32>
      %21 = arith.select %17, %15, %20 : vector<128x128xi1>, vector<128x128xf32>
      %22 = arith.truncf %21 : vector<128x128xf32> to vector<128x128xbf16>
      %c0_16 = arith.constant 0 : index
      %c0_17 = arith.constant 0 : index
      %23 = vector.load %arg7[%c0_16, %c0_17] : memref<128x128xbf16, #tpu.memory_space<vmem>>, vector<128x128xbf16>
      tpu.vector_store %arg7[%c0_16, %c0_17], %22 {strides = array<i32>} : memref<128x128xbf16, #tpu.memory_space<vmem>>, vector<128x128xbf16>,
    } else {
    }
    return
  }
  func.func @transform_0(%arg0: i32, %arg1: i32, %arg2: i32) -> (i32, i32) {
    %c0_i32 = arith.constant 0 : i32
    return %arg0, %arg2 : i32, i32
  }
  func.func @transform_1(%arg0: i32, %arg1: i32, %arg2: i32) -> (i32, i32) {
    %c0_i32 = arith.constant 0 : i32
    return %arg2, %arg1 : i32, i32
  }
  func.func @transform_2(%arg0: i32, %arg1: i32, %arg2: i32) -> (i32, i32) {
    %c0_i32 = arith.constant 0 : i32
    %c0_i32_0 = arith.constant 0 : i32
    return %c0_i32, %arg1 : i32, i32
  }
  func.func @transform_3(%arg0: i32, %arg1: i32, %arg2: i32) -> (i32, i32) {
    %c0_i32 = arith.constant 0 : i32
    %c0_i32_0 = arith.constant 0 : i32
    return %c0_i32, %arg1 : i32, i32
  }
  func.func @transform_4(%arg0: i32, %arg1: i32, %arg2: i32) -> (i32, i32) {
    %c0_i32 = arith.constant 0 : i32
    return %arg0, %arg1 : i32, i32
  }
}

module attributes {stable_mosaic.version = 11 : i64} {
  func.func @_mm_kernel(%arg0: i32, %arg1: i32, %arg2: i32, %arg3: memref<16x128xbf16, #tpu.memory_space<vmem>>, %arg4: memref<128x128xbf16, #tpu.memory_space<vmem>>, %arg5: memref<1x128xf32, #tpu.memory_space<vmem>>, %arg6: memref<1x128xf32, #tpu.memory_space<vmem>>, %arg7: memref<16x128xf32, #tpu.memory_space<vmem>>, %arg8: memref<16x128xf32, #tpu.memory_space<vmem>>) attributes {dimension_semantics = [#tpu.dimension_semantics<parallel>, #tpu.dimension_semantics<parallel>, #tpu.dimension_semantics<arbitrary>], iteration_bounds = array<i64: 1, 1, 1>, scalar_prefetch = 0 : i64, scratch_operands = 1 : i64, tpu.core_type = #tpu.core_type<tc>, window_params = [{transform_indices = @transform_0, window_bounds = array<i64: 16, 128>}, {transform_indices = @transform_1, window_bounds = array<i64: 128, 128>}, {transform_indices = @transform_2, window_bounds = array<i64: 1, 128>}, {transform_indices = @transform_3, window_bounds = array<i64: 1, 128>}, {transform_indices = @transform_4, window_bounds = array<i64: 16, 128>}]} {
    %c0_i32 = arith.constant 0 : i32
    %0 = arith.cmpi eq, %arg2, %c0_i32 : i32
    %1 = arith.extui %0 : i1 to i32
    %c0_i32_0 = arith.constant 0 : i32
    %2 = arith.cmpi ne, %1, %c0_i32_0 : i32
    scf.if %2 {
      %cst_10 = arith.constant 0.000000e+00 : f32
      %12 = vector.broadcast %cst_10 : f32 to vector<16x128xf32>
      %c0_11 = arith.constant 0 : index
      %c0_12 = arith.constant 0 : index
      %13 = vector.load %arg8[%c0_11, %c0_12] : memref<16x128xf32, #tpu.memory_space<vmem>>, vector<16x128xf32>
      tpu.vector_store %arg8[%c0_11, %c0_12], %12 {strides = array<i32>} : memref<16x128xf32, #tpu.memory_space<vmem>>, vector<16x128xf32>,
    } else {
    }
    %c0 = arith.constant 0 : index
    %c0_1 = arith.constant 0 : index
    %3 = vector.load %arg8[%c0, %c0_1] : memref<16x128xf32, #tpu.memory_space<vmem>>, vector<16x128xf32>
    %c0_2 = arith.constant 0 : index
    %c0_3 = arith.constant 0 : index
    %4 = vector.load %arg3[%c0_2, %c0_3] : memref<16x128xbf16, #tpu.memory_space<vmem>>, vector<16x128xbf16>
    %c0_4 = arith.constant 0 : index
    %c0_5 = arith.constant 0 : index
    %5 = vector.load %arg4[%c0_4, %c0_5] : memref<128x128xbf16, #tpu.memory_space<vmem>>, vector<128x128xbf16>
    %cst = arith.constant dense<0.000000e+00> : vector<16x128xf32>
    %6 = tpu.matmul %4, %5, %cst {dimension_numbers = #tpu.dot_dimension_numbers<[1], [0], [0], [1], [0, 0, 1, 1], [], []>} : vector<16x128xbf16>, vector<128x128xbf16>, vector<16x128xf32> -> vector<16x128xf32>
    %7 = arith.addf %3, %6 : vector<16x128xf32>
    %c0_6 = arith.constant 0 : index
    %c0_7 = arith.constant 0 : index
    %8 = vector.load %arg8[%c0_6, %c0_7] : memref<16x128xf32, #tpu.memory_space<vmem>>, vector<16x128xf32>
    tpu.vector_store %arg8[%c0_6, %c0_7], %7 {strides = array<i32>} : memref<16x128xf32, #tpu.memory_space<vmem>>, vector<16x128xf32>,
    %c0_i32_8 = arith.constant 0 : i32
    %9 = arith.cmpi eq, %arg2, %c0_i32_8 : i32
    %10 = arith.extui %9 : i1 to i32
    %c0_i32_9 = arith.constant 0 : i32
    %11 = arith.cmpi ne, %10, %c0_i32_9 : i32
    scf.if %11 {
      %c0_10 = arith.constant 0 : index
      %c0_11 = arith.constant 0 : index
      %12 = vector.load %arg8[%c0_10, %c0_11] : memref<16x128xf32, #tpu.memory_space<vmem>>, vector<16x128xf32>
      %c0_12 = arith.constant 0 : index
      %c0_13 = arith.constant 0 : index
      %13 = vector.load %arg5[%c0_12, %c0_13] : memref<1x128xf32, #tpu.memory_space<vmem>>, vector<1x128xf32>
      %14 = vector.broadcast %13 : vector<1x128xf32> to vector<16x128xf32>
      %15 = arith.addf %12, %14 : vector<16x128xf32>
      %cst_14 = arith.constant 0.000000e+00 : f32
      %16 = vector.broadcast %cst_14 : f32 to vector<16x128xf32>
      %17 = arith.cmpf ogt, %15, %16 : vector<16x128xf32>
      %c0_15 = arith.constant 0 : index
      %c0_16 = arith.constant 0 : index
      %18 = vector.load %arg6[%c0_15, %c0_16] : memref<1x128xf32, #tpu.memory_space<vmem>>, vector<1x128xf32>
      %19 = vector.broadcast %18 : vector<1x128xf32> to vector<16x128xf32>
      %20 = arith.mulf %19, %15 : vector<16x128xf32>
      %21 = arith.select %17, %15, %20 : vector<16x128xi1>, vector<16x128xf32>
      %c0_17 = arith.constant 0 : index
      %c0_18 = arith.constant 0 : index
      %22 = vector.load %arg7[%c0_17, %c0_18] : memref<16x128xf32, #tpu.memory_space<vmem>>, vector<16x128xf32>
      tpu.vector_store %arg7[%c0_17, %c0_18], %21 {strides = array<i32>} : memref<16x128xf32, #tpu.memory_space<vmem>>, vector<16x128xf32>,
    } else {
    }
    return
  }
  func.func @transform_0(%arg0: i32, %arg1: i32, %arg2: i32) -> (i32, i32) {
    %c0_i32 = arith.constant 0 : i32
    return %arg0, %arg2 : i32, i32
  }
  func.func @transform_1(%arg0: i32, %arg1: i32, %arg2: i32) -> (i32, i32) {
    %c0_i32 = arith.constant 0 : i32
    return %arg2, %arg1 : i32, i32
  }
  func.func @transform_2(%arg0: i32, %arg1: i32, %arg2: i32) -> (i32, i32) {
    %c0_i32 = arith.constant 0 : i32
    %c0_i32_0 = arith.constant 0 : i32
    return %c0_i32, %arg1 : i32, i32
  }
  func.func @transform_3(%arg0: i32, %arg1: i32, %arg2: i32) -> (i32, i32) {
    %c0_i32 = arith.constant 0 : i32
    %c0_i32_0 = arith.constant 0 : i32
    return %c0_i32, %arg1 : i32, i32
  }
  func.func @transform_4(%arg0: i32, %arg1: i32, %arg2: i32) -> (i32, i32) {
    %c0_i32 = arith.constant 0 : i32
    return %arg0, %arg1 : i32, i32
  }
}

module attributes {stable_mosaic.version = 11 : i64} {
  func.func @_mm_kernel(%arg0: i32, %arg1: i32, %arg2: i32, %arg3: memref<16x128xbf16, #tpu.memory_space<vmem>>, %arg4: memref<128x128xbf16, #tpu.memory_space<vmem>>, %arg5: memref<1x128xf32, #tpu.memory_space<vmem>>, %arg6: memref<1x128xf32, #tpu.memory_space<vmem>>, %arg7: memref<16x128xbf16, #tpu.memory_space<vmem>>, %arg8: memref<16x128xf32, #tpu.memory_space<vmem>>) attributes {dimension_semantics = [#tpu.dimension_semantics<parallel>, #tpu.dimension_semantics<parallel>, #tpu.dimension_semantics<arbitrary>], iteration_bounds = array<i64: 1, 1, 1>, scalar_prefetch = 0 : i64, scratch_operands = 1 : i64, tpu.core_type = #tpu.core_type<tc>, window_params = [{transform_indices = @transform_0, window_bounds = array<i64: 16, 128>}, {transform_indices = @transform_1, window_bounds = array<i64: 128, 128>}, {transform_indices = @transform_2, window_bounds = array<i64: 1, 128>}, {transform_indices = @transform_3, window_bounds = array<i64: 1, 128>}, {transform_indices = @transform_4, window_bounds = array<i64: 16, 128>}]} {
    %c0_i32 = arith.constant 0 : i32
    %0 = arith.cmpi eq, %arg2, %c0_i32 : i32
    %1 = arith.extui %0 : i1 to i32
    %c0_i32_0 = arith.constant 0 : i32
    %2 = arith.cmpi ne, %1, %c0_i32_0 : i32
    scf.if %2 {
      %cst_10 = arith.constant 0.000000e+00 : f32
      %12 = vector.broadcast %cst_10 : f32 to vector<16x128xf32>
      %c0_11 = arith.constant 0 : index
      %c0_12 = arith.constant 0 : index
      %13 = vector.load %arg8[%c0_11, %c0_12] : memref<16x128xf32, #tpu.memory_space<vmem>>, vector<16x128xf32>
      tpu.vector_store %arg8[%c0_11, %c0_12], %12 {strides = array<i32>} : memref<16x128xf32, #tpu.memory_space<vmem>>, vector<16x128xf32>,
    } else {
    }
    %c0 = arith.constant 0 : index
    %c0_1 = arith.constant 0 : index
    %3 = vector.load %arg8[%c0, %c0_1] : memref<16x128xf32, #tpu.memory_space<vmem>>, vector<16x128xf32>
    %c0_2 = arith.constant 0 : index
    %c0_3 = arith.constant 0 : index
    %4 = vector.load %arg3[%c0_2, %c0_3] : memref<16x128xbf16, #tpu.memory_space<vmem>>, vector<16x128xbf16>
    %c0_4 = arith.constant 0 : index
    %c0_5 = arith.constant 0 : index
    %5 = vector.load %arg4[%c0_4, %c0_5] : memref<128x128xbf16, #tpu.memory_space<vmem>>, vector<128x128xbf16>
    %cst = arith.constant dense<0.000000e+00> : vector<16x128xf32>
    %6 = tpu.matmul %4, %5, %cst {dimension_numbers = #tpu.dot_dimension_numbers<[1], [0], [0], [1], [0, 0, 1, 1], [], []>} : vector<16x128xbf16>, vector<128x128xbf16>, vector<16x128xf32> -> vector<16x128xf32>
    %7 = arith.addf %3, %6 : vector<16x128xf32>
    %c0_6 = arith.constant 0 : index
    %c0_7 = arith.constant 0 : index
    %8 = vector.load %arg8[%c0_6, %c0_7] : memref<16x128xf32, #tpu.memory_space<vmem>>, vector<16x128xf32>
    tpu.vector_store %arg8[%c0_6, %c0_7], %7 {strides = array<i32>} : memref<16x128xf32, #tpu.memory_space<vmem>>, vector<16x128xf32>,
    %c0_i32_8 = arith.constant 0 : i32
    %9 = arith.cmpi eq, %arg2, %c0_i32_8 : i32
    %10 = arith.extui %9 : i1 to i32
    %c0_i32_9 = arith.constant 0 : i32
    %11 = arith.cmpi ne, %10, %c0_i32_9 : i32
    scf.if %11 {
      %c0_10 = arith.constant 0 : index
      %c0_11 = arith.constant 0 : index
      %12 = vector.load %arg8[%c0_10, %c0_11] : memref<16x128xf32, #tpu.memory_space<vmem>>, vector<16x128xf32>
      %c0_12 = arith.constant 0 : index
      %c0_13 = arith.constant 0 : index
      %13 = vector.load %arg5[%c0_12, %c0_13] : memref<1x128xf32, #tpu.memory_space<vmem>>, vector<1x128xf32>
      %14 = vector.broadcast %13 : vector<1x128xf32> to vector<16x128xf32>
      %15 = arith.addf %12, %14 : vector<16x128xf32>
      %cst_14 = arith.constant 0.000000e+00 : f32
      %16 = vector.broadcast %cst_14 : f32 to vector<16x128xf32>
      %17 = arith.cmpf ogt, %15, %16 : vector<16x128xf32>
      %c0_15 = arith.constant 0 : index
      %c0_16 = arith.constant 0 : index
      %18 = vector.load %arg6[%c0_15, %c0_16] : memref<1x128xf32, #tpu.memory_space<vmem>>, vector<1x128xf32>
      %19 = vector.broadcast %18 : vector<1x128xf32> to vector<16x128xf32>
      %20 = arith.mulf %19, %15 : vector<16x128xf32>
      %21 = arith.select %17, %15, %20 : vector<16x128xi1>, vector<16x128xf32>
      %22 = arith.truncf %21 : vector<16x128xf32> to vector<16x128xbf16>
      %c0_17 = arith.constant 0 : index
      %c0_18 = arith.constant 0 : index
      %23 = vector.load %arg7[%c0_17, %c0_18] : memref<16x128xbf16, #tpu.memory_space<vmem>>, vector<16x128xbf16>
      tpu.vector_store %arg7[%c0_17, %c0_18], %22 {strides = array<i32>} : memref<16x128xbf16, #tpu.memory_space<vmem>>, vector<16x128xbf16>,
    } else {
    }
    return
  }
  func.func @transform_0(%arg0: i32, %arg1: i32, %arg2: i32) -> (i32, i32) {
    %c0_i32 = arith.constant 0 : i32
    return %arg0, %arg2 : i32, i32
  }
  func.func @transform_1(%arg0: i32, %arg1: i32, %arg2: i32) -> (i32, i32) {
    %c0_i32 = arith.constant 0 : i32
    return %arg2, %arg1 : i32, i32
  }
  func.func @transform_2(%arg0: i32, %arg1: i32, %arg2: i32) -> (i32, i32) {
    %c0_i32 = arith.constant 0 : i32
    %c0_i32_0 = arith.constant 0 : i32
    return %c0_i32, %arg1 : i32, i32
  }
  func.func @transform_3(%arg0: i32, %arg1: i32, %arg2: i32) -> (i32, i32) {
    %c0_i32 = arith.constant 0 : i32
    %c0_i32_0 = arith.constant 0 : i32
    return %c0_i32, %arg1 : i32, i32
  }
  func.func @transform_4(%arg0: i32, %arg1: i32, %arg2: i32) -> (i32, i32) {
    %c0_i32 = arith.constant 0 : i32
    return %arg0, %arg1 : i32, i32
  }
}

module attributes {stable_mosaic.version = 11 : i64} {
  func.func @_mm_kernel(%arg0: i32, %arg1: i32, %arg2: i32, %arg3: memref<128x128xbf16, #tpu.memory_space<vmem>>, %arg4: memref<128x128xbf16, #tpu.memory_space<vmem>>, %arg5: memref<1x128xf32, #tpu.memory_space<vmem>>, %arg6: memref<1x128xf32, #tpu.memory_space<vmem>>, %arg7: memref<128x128xf32, #tpu.memory_space<vmem>>, %arg8: memref<128x128xf32, #tpu.memory_space<vmem>>) attributes {dimension_semantics = [#tpu.dimension_semantics<parallel>, #tpu.dimension_semantics<parallel>, #tpu.dimension_semantics<arbitrary>], iteration_bounds = array<i64: 1, 1, 1>, scalar_prefetch = 0 : i64, scratch_operands = 1 : i64, tpu.core_type = #tpu.core_type<tc>, window_params = [{transform_indices = @transform_0, window_bounds = array<i64: 128, 128>}, {transform_indices = @transform_1, window_bounds = array<i64: 128, 128>}, {transform_indices = @transform_2, window_bounds = array<i64: 1, 128>}, {transform_indices = @transform_3, window_bounds = array<i64: 1, 128>}, {transform_indices = @transform_4, window_bounds = array<i64: 128, 128>}]} {
    %c0_i32 = arith.constant 0 : i32
    %0 = arith.cmpi eq, %arg2, %c0_i32 : i32
    %1 = arith.extui %0 : i1 to i32
    %c0_i32_0 = arith.constant 0 : i32
    %2 = arith.cmpi ne, %1, %c0_i32_0 : i32
    scf.if %2 {
      %cst_10 = arith.constant 0.000000e+00 : f32
      %12 = vector.broadcast %cst_10 : f32 to vector<128x128xf32>
      %c0_11 = arith.constant 0 : index
      %c0_12 = arith.constant 0 : index
      %13 = vector.load %arg8[%c0_11, %c0_12] : memref<128x128xf32, #tpu.memory_space<vmem>>, vector<128x128xf32>
      tpu.vector_store %arg8[%c0_11, %c0_12], %12 {strides = array<i32>} : memref<128x128xf32, #tpu.memory_space<vmem>>, vector<128x128xf32>,
    } else {
    }
    %c0 = arith.constant 0 : index
    %c0_1 = arith.constant 0 : index
    %3 = vector.load %arg8[%c0, %c0_1] : memref<128x128xf32, #tpu.memory_space<vmem>>, vector<128x128xf32>
    %c0_2 = arith.constant 0 : index
    %c0_3 = arith.constant 0 : index
    %4 = vector.load %arg3[%c0_2, %c0_3] : memref<128x128xbf16, #tpu.memory_space<vmem>>, vector<128x128xbf16>
    %c0_4 = arith.constant 0 : index
    %c0_5 = arith.constant 0 : index
    %5 = vector.load %arg4[%c0_4, %c0_5] : memref<128x128xbf16, #tpu.memory_space<vmem>>, vector<128x128xbf16>
    %cst = arith.constant dense<0.000000e+00> : vector<128x128xf32>
    %6 = tpu.matmul %4, %5, %cst {dimension_numbers = #tpu.dot_dimension_numbers<[1], [0], [0], [1], [0, 0, 1, 1], [], []>} : vector<128x128xbf16>, vector<128x128xbf16>, vector<128x128xf32> -> vector<128x128xf32>
    %7 = arith.addf %3, %6 : vector<128x128xf32>
    %c0_6 = arith.constant 0 : index
    %c0_7 = arith.constant 0 : index
    %8 = vector.load %arg8[%c0_6, %c0_7] : memref<128x128xf32, #tpu.memory_space<vmem>>, vector<128x128xf32>
    tpu.vector_store %arg8[%c0_6, %c0_7], %7 {strides = array<i32>} : memref<128x128xf32, #tpu.memory_space<vmem>>, vector<128x128xf32>,
    %c0_i32_8 = arith.constant 0 : i32
    %9 = arith.cmpi eq, %arg2, %c0_i32_8 : i32
    %10 = arith.extui %9 : i1 to i32
    %c0_i32_9 = arith.constant 0 : i32
    %11 = arith.cmpi ne, %10, %c0_i32_9 : i32
    scf.if %11 {
      %c0_10 = arith.constant 0 : index
      %c0_11 = arith.constant 0 : index
      %12 = vector.load %arg8[%c0_10, %c0_11] : memref<128x128xf32, #tpu.memory_space<vmem>>, vector<128x128xf32>
      %c0_12 = arith.constant 0 : index
      %c0_13 = arith.constant 0 : index
      %13 = vector.load %arg5[%c0_12, %c0_13] : memref<1x128xf32, #tpu.memory_space<vmem>>, vector<1x128xf32>
      %14 = vector.broadcast %13 : vector<1x128xf32> to vector<128x128xf32>
      %15 = arith.addf %12, %14 : vector<128x128xf32>
      %cst_14 = arith.constant 0.000000e+00 : f32
      %16 = vector.broadcast %cst_14 : f32 to vector<128x128xf32>
      %17 = arith.cmpf ogt, %15, %16 : vector<128x128xf32>
      %c0_15 = arith.constant 0 : index
      %c0_16 = arith.constant 0 : index
      %18 = vector.load %arg6[%c0_15, %c0_16] : memref<1x128xf32, #tpu.memory_space<vmem>>, vector<1x128xf32>
      %19 = vector.broadcast %18 : vector<1x128xf32> to vector<128x128xf32>
      %20 = arith.mulf %19, %15 : vector<128x128xf32>
      %21 = arith.select %17, %15, %20 : vector<128x128xi1>, vector<128x128xf32>
      %c0_17 = arith.constant 0 : index
      %c0_18 = arith.constant 0 : index
      %22 = vector.load %arg7[%c0_17, %c0_18] : memref<128x128xf32, #tpu.memory_space<vmem>>, vector<128x128xf32>
      tpu.vector_store %arg7[%c0_17, %c0_18], %21 {strides = array<i32>} : memref<128x128xf32, #tpu.memory_space<vmem>>, vector<128x128xf32>,
    } else {
    }
    return
  }
  func.func @transform_0(%arg0: i32, %arg1: i32, %arg2: i32) -> (i32, i32) {
    %c0_i32 = arith.constant 0 : i32
    return %arg0, %arg2 : i32, i32
  }
  func.func @transform_1(%arg0: i32, %arg1: i32, %arg2: i32) -> (i32, i32) {
    %c0_i32 = arith.constant 0 : i32
    return %arg2, %arg1 : i32, i32
  }
  func.func @transform_2(%arg0: i32, %arg1: i32, %arg2: i32) -> (i32, i32) {
    %c0_i32 = arith.constant 0 : i32
    %c0_i32_0 = arith.constant 0 : i32
    return %c0_i32, %arg1 : i32, i32
  }
  func.func @transform_3(%arg0: i32, %arg1: i32, %arg2: i32) -> (i32, i32) {
    %c0_i32 = arith.constant 0 : i32
    %c0_i32_0 = arith.constant 0 : i32
    return %c0_i32, %arg1 : i32, i32
  }
  func.func @transform_4(%arg0: i32, %arg1: i32, %arg2: i32) -> (i32, i32) {
    %c0_i32 = arith.constant 0 : i32
    return %arg0, %arg1 : i32, i32
  }
}

</mosaic_0001>

<bundles_post_ra>
// kernel: forward.5
= control target key start
LH: loop header
LB: loop body
LE: loop exit
PB: predicated region body
PF: predicated region fallthrough
CT: control target
= control target key end

     0   :  { %s808_s1 = inlined_call_operand.vmem [shape: bf16[128,128], index: 1, kind: input, shape index: {}]   ;;  %s809_s0 = inlined_call_operand.vmem [shape: bf16[128,128], index: 0, kind: input, shape index: {}]   ;;  %s810_s2 = inlined_call_operand.vmem [shape: f32[1,128], index: 2, kind: input, shape index: {}]   ;;  %s811_s3 = inlined_call_operand.vmem [shape: f32[1,128], index: 3, kind: input, shape index: {}]   ;;  %s812_s4 = inlined_call_operand.vmem [shape: bf16[128,128], index: 4, kind: output, shape index: {}]  }
   0x1   :  { %v653_v0 = vld [vmem:[%s808_s1] sm:$0xff]   ;;  %v654_v1 = vld [vmem:[%s808_s1 + $0x8] sm:$0xff]   ;;  %v655_v2 = vld [vmem:[%s808_s1 + $0x10] sm:$0xff]  }
   0x2   :  { %605 = vmatprep.subr.bf16.mxu0 %v653_v0  ;;  %637 = vmatprep.subr.bf16.mxu1 %v653_v0  ;;  %v656_v3 = vld [vmem:[%s808_s1 + $0x18] sm:$0xff]   ;;  %v661_v4 = vld [vmem:[%s809_s0] sm:$0xff]   ;;  %v658_v7 = vld [vmem:[%s808_s1 + $0x28] sm:$0xff]  }
   0x3   :  { %606 = vmatpush3.bf16.msra.mxu0 %v653_v0  ;;  %645 = vmatpush3.bf16.msra.mxu1 %v653_v0  ;;  %v662_v5 = vld [vmem:[%s809_s0 + $0x20] sm:$0xff]   ;;  %v659_v8 = vld [vmem:[%s808_s1 + $0x30] sm:$0xff]   ;;  %v660_v9 = vld [vmem:[%s808_s1 + $0x38] sm:$0xff]  }
   0x4   :  { %607 = vmatprep.subr.bf16.mxu0 %v654_v1  ;;  %638 = vmatprep.subr.bf16.mxu1 %v654_v1  ;;  %v657_v6 = vld [vmem:[%s808_s1 + $0x20] sm:$0xff]   ;;  %v663_v10 = vld [vmem:[%s809_s0 + $0x8] sm:$0xff]   ;;  %v665_v12 = vld [vmem:[%s809_s0 + $0x10] sm:$0xff]  }
   0x5   :  { %621 = vmatprep.mubr.bf16.mxu0 %v661_v4  ;;  %629 = vmatprep.mubr.bf16.mxu1 %v662_v5  ;;  %v664_v11 = vld [vmem:[%s809_s0 + $0x28] sm:$0xff]   ;;  %v666_v13 = vld [vmem:[%s809_s0 + $0x30] sm:$0xff]   ;;  %v667_v14 = vld [vmem:[%s809_s0 + $0x18] sm:$0xff]  }
   0x6   :  { %v668_v15 = vld [vmem:[%s809_s0 + $0x38] sm:$0xff]   ;;  %v745_v16 = vld [vmem:[%s810_s2] ss:$0 sm:$0xff] }
   0x7   :  { %608 = vmatpush3.bf16.msra.mxu0 %v654_v1  ;;  %646 = vmatpush3.bf16.msra.mxu1 %v654_v1  ;;  %v750_v18 = vld [vmem:[%s811_s3] ss:$0 sm:$0xff] }
   0x8   :  { %609 = vmatprep.subr.bf16.mxu0 %v655_v2  ;;  %639 = vmatprep.subr.bf16.mxu1 %v655_v2 }
   0xb   :  { %610 = vmatpush3.bf16.msra.mxu0 %v655_v2  ;;  %647 = vmatpush3.bf16.msra.mxu1 %v655_v2 }
   0xc   :  { %611 = vmatprep.subr.bf16.mxu0 %v656_v3  ;;  %640 = vmatprep.subr.bf16.mxu1 %v656_v3 }
   0xf   :  { %612 = vmatpush3.bf16.msra.mxu0 %v656_v3  ;;  %648 = vmatpush3.bf16.msra.mxu1 %v656_v3 }
  0x10   :  { %613 = vmatprep.subr.bf16.mxu0 %v657_v6  ;;  %641 = vmatprep.subr.bf16.mxu1 %v657_v6 }
  0x13   :  { %614 = vmatpush3.bf16.msra.mxu0 %v657_v6  ;;  %649 = vmatpush3.bf16.msra.mxu1 %v657_v6 }
  0x14   :  { %615 = vmatprep.subr.bf16.mxu0 %v658_v7  ;;  %642 = vmatprep.subr.bf16.mxu1 %v658_v7 }
  0x17   :  { %616 = vmatpush3.bf16.msra.mxu0 %v658_v7  ;;  %650 = vmatpush3.bf16.msra.mxu1 %v658_v7 }
  0x18   :  { %617 = vmatprep.subr.bf16.mxu0 %v659_v8  ;;  %643 = vmatprep.subr.bf16.mxu1 %v659_v8 }
  0x1b   :  { %618 = vmatpush3.bf16.msra.mxu0 %v659_v8  ;;  %651 = vmatpush3.bf16.msra.mxu1 %v659_v8 }
  0x1c   :  { %619 = vmatprep.subr.bf16.mxu0 %v660_v9  ;;  %644 = vmatprep.subr.bf16.mxu1 %v660_v9 }
  0x1f   :  { %620 = vmatpush3.bf16.msra.mxu0 %v660_v9  ;;  %652 = vmatpush3.bf16.msra.mxu1 %v660_v9 }
  0x22   :  { %622 = vmatmul.mubr.bf16.vlgmr.msra.gmra.mrb[0].mxu0 %v663_v10  ;;  %630 = vmatmul.mubr.bf16.vlgmr.msra.gmra.mrb[0].mxu1 %v664_v11 }
  0x23   :  { %625 = vmatprep.mubr.bf16.mxu0 %v665_v12  ;;  %633 = vmatprep.mubr.bf16.mxu1 %v666_v13 }
  0x2a   :  { %626 = vmatmul.mubr.bf16.gmra.mrb[4].mxu0 %v667_v14  ;;  %634 = vmatmul.mubr.bf16.gmra.mrb[4].mxu1 %v668_v15 }
  0xf5   :  { %v623_v17 = vpop.f32.mrb[0].mxu0  ;;  %v631_v19 = vpop.f32.mrb[0].mxu1 }
  0xf6   :  { %v339_v20 = vadd.f32 %v623_v17, %v745_v16  ;;  %v347_v21 = vadd.f32 %v631_v19, %v745_v16  ;;  %v216_v22 = vpop.f32.mrb[1].mxu0  ;;  %v248_v23 = vpop.f32.mrb[1].mxu1 }
  0xf7   :  { %v337_v24 = vadd.f32 %v745_v16, %v216_v22  ;;  %v345_v25 = vadd.f32 %v745_v16, %v248_v23  ;;  %v624_v26 = vpop.f32.mrb[2].mxu0  ;;  %v632_v27 = vpop.f32.mrb[2].mxu1 }
  0xf8   :  { %vm355_vm0 = vcmp.gt.f32.partialorder %v339_v20, 0.0  ;;  %v378_v28 = vmul.f32 %v750_v18, %v339_v20  ;;  %vm363_vm1 = vcmp.gt.f32.partialorder %v347_v21, 0.0  ;;  %v386_v29 = vmul.f32 %v750_v18, %v347_v21  ;;  %v219_v30 = vpop.f32.mrb[3].mxu0  ;;  %v251_v31 = vpop.f32.mrb[3].mxu1 }
  0xf9   :  { %vm353_vm2 = vcmp.gt.f32.partialorder %v337_v24, 0.0  ;;  %v376_v32 = vmul.f32 %v750_v18, %v337_v24  ;;  %vm361_vm3 = vcmp.gt.f32.partialorder %v345_v25, 0.0  ;;  %v384_v33 = vmul.f32 %v750_v18, %v345_v25 }
  0xfa   :  { %v394_v34 = vsel %vm355_vm0, %v339_v20, %v378_v28  ;;  %v402_v35 = vsel %vm363_vm1, %v347_v21, %v386_v29  ;;  %v340_v36 = vadd.f32 %v624_v26, %v745_v16  ;;  %v348_v37 = vadd.f32 %v632_v27, %v745_v16 }
  0xfb   :  { %v392_v38 = vsel %vm353_vm2, %v337_v24, %v376_v32  ;;  %v400_v39 = vsel %vm361_vm3, %v345_v25, %v384_v33  ;;  %v338_v40 = vadd.f32 %v745_v16, %v219_v30  ;;  %v346_v41 = vadd.f32 %v745_v16, %v251_v31 }
  0xfc   :  { %vm356_vm4 = vcmp.gt.f32.partialorder %v340_v36, 0.0  ;;  %v379_v42 = vmul.f32 %v750_v18, %v340_v36  ;;  %vm364_vm5 = vcmp.gt.f32.partialorder %v348_v37, 0.0  ;;  %v387_v43 = vmul.f32 %v750_v18, %v348_v37 }
  0xfd   :  { %vm354_vm6 = vcmp.gt.f32.partialorder %v338_v40, 0.0  ;;  %v377_v44 = vmul.f32 %v750_v18, %v338_v40  ;;  %vm362_vm7 = vcmp.gt.f32.partialorder %v346_v41, 0.0  ;;  %v385_v45 = vmul.f32 %v750_v18, %v346_v41  ;;  %v627_v46 = vpop.f32.mrb[4].mxu0  ;;  %v635_v47 = vpop.f32.mrb[4].mxu1 }
  0xfe   :  { %v395_v48 = vsel %vm356_vm4, %v340_v36, %v379_v42  ;;  %v403_v49 = vsel %vm364_vm5, %v348_v37, %v387_v43  ;;  %v343_v50 = vadd.f32 %v627_v46, %v745_v16  ;;  %v351_v51 = vadd.f32 %v635_v47, %v745_v16  ;;  %v232_v52 = vpop.f32.mrb[5].mxu0  ;;  %v264_v53 = vpop.f32.mrb[5].mxu1 }
  0xff   :  { %v550_v54 = vpack.c.bf16 %v395_v48, %v394_v34  ;;  %v570_v55 = vpack.c.bf16 %v403_v49, %v402_v35  ;;  %v393_v56 = vsel %vm354_vm6, %v338_v40, %v377_v44  ;;  %v401_v57 = vsel %vm362_vm7, %v346_v41, %v385_v45  ;;  %v628_v58 = vpop.f32.mrb[6].mxu0  ;;  %v636_v59 = vpop.f32.mrb[6].mxu1 }
 0x100   :  { %v545_v60 = vpack.c.bf16 %v393_v56, %v392_v38  ;;  %v565_v61 = vpack.c.bf16 %v401_v57, %v400_v39  ;;  %vm359_vm8 = vcmp.gt.f32.partialorder %v343_v50, 0.0  ;;  %v382_v62 = vmul.f32 %v750_v18, %v343_v50  ;;  %v235_v63 = vpop.f32.mrb[7].mxu0  ;;  %v267_v0 = vpop.f32.mrb[7].mxu1 }
 0x101   :  { %582 = vst [vmem:[%s812_s4 + $0x8] sm:$0xff] %v550_v54   ;;  %586 = vst [vmem:[%s812_s4 + $0x28] sm:$0xff] %v570_v55   ;;  %vm367_vm9 = vcmp.gt.f32.partialorder %v351_v51, 0.0  ;;  %v390_v1 = vmul.f32 %v750_v18, %v351_v51  ;;  %v341_v2 = vadd.f32 %v745_v16, %v232_v52  ;;  %v349_v3 = vadd.f32 %v745_v16, %v264_v53 }
 0x102   :  { %546 = vst [vmem:[%s812_s4] sm:$0xff] %v545_v60   ;;  %585 = vst [vmem:[%s812_s4 + $0x20] sm:$0xff] %v565_v61   ;;  %v344_v4 = vadd.f32 %v628_v58, %v745_v16  ;;  %v352_v5 = vadd.f32 %v636_v59, %v745_v16  ;;  %v342_v6 = vadd.f32 %v745_v16, %v235_v63 }
 0x103   :  { %v398_v7 = vsel %vm359_vm8, %v343_v50, %v382_v62  ;;  %v380_v8 = vmul.f32 %v750_v18, %v341_v2  ;;  %vm357_vm10 = vcmp.gt.f32.partialorder %v341_v2, 0.0  ;;  %v406_v10 = vsel %vm367_vm9, %v351_v51, %v390_v1 }
 0x104   :  { %vm360_vm11 = vcmp.gt.f32.partialorder %v344_v4, 0.0  ;;  %v383_v9 = vmul.f32 %v750_v18, %v344_v4  ;;  %vm368_vm12 = vcmp.gt.f32.partialorder %v352_v5, 0.0  ;;  %v391_v11 = vmul.f32 %v750_v18, %v352_v5 }
 0x105   :  { %vm358_vm13 = vcmp.gt.f32.partialorder %v342_v6, 0.0  ;;  %v381_v12 = vmul.f32 %v750_v18, %v342_v6  ;;  %vm365_vm14 = vcmp.gt.f32.partialorder %v349_v3, 0.0  ;;  %v388_v13 = vmul.f32 %v750_v18, %v349_v3 }
 0x106   :  { %v399_v14 = vsel %vm360_vm11, %v344_v4, %v383_v9  ;;  %v350_v15 = vadd.f32 %v745_v16, %v267_v0  ;;  %v396_v17 = vsel %vm357_vm10, %v341_v2, %v380_v8  ;;  %v407_v20 = vsel %vm368_vm12, %v352_v5, %v391_v11 }
 0x107   :  { %v560_v19 = vpack.c.bf16 %v399_v14, %v398_v7  ;;  %v397_v21 = vsel %vm358_vm13, %v342_v6, %v381_v12  ;;  %v580_v22 = vpack.c.bf16 %v407_v20, %v406_v10  ;;  %v404_v25 = vsel %vm365_vm14, %v349_v3, %v388_v13 }
 0x108   :  { %v555_v23 = vpack.c.bf16 %v397_v21, %v396_v17  ;;  %vm366_vm15 = vcmp.gt.f32.partialorder %v350_v15, 0.0  ;;  %v389_v24 = vmul.f32 %v750_v18, %v350_v15 }
 0x109   :  { %584 = vst [vmem:[%s812_s4 + $0x18] sm:$0xff] %v560_v19   ;;  %588 = vst [vmem:[%s812_s4 + $0x38] sm:$0xff] %v580_v22  }
 0x10a   :  { %583 = vst [vmem:[%s812_s4 + $0x10] sm:$0xff] %v555_v23   ;;  %v405_v16 = vsel %vm366_vm15, %v350_v15, %v389_v24 }
 0x10b   :  { %v575_v26 = vpack.c.bf16 %v405_v16, %v404_v25 }
 0x10d   :  { %587 = vst [vmem:[%s812_s4 + $0x30] sm:$0xff] %v575_v26  }

// kernel: mul.10
= control target key start
LH: loop header
LB: loop body
LE: loop exit
PB: predicated region body
PF: predicated region fallthrough
CT: control target
= control target key end

     0   :  { %s118_s0 = inlined_call_operand.vmem [shape: f32[2,32], index: 0, kind: input, shape index: {}]   ;;  %s119_s1 = inlined_call_operand.vmem [shape: f32[2,8,8,32], index: 1, kind: output, shape index: {}]  }
   0x1   :  { %v4_v0 = vld [vmem:[%s118_s0] ss:$0 sm:$0xff]  ;;  %v38_v1 = vld [vmem:[%s118_s0 + $0x1] ss:$0 sm:$0xff] }
   0x2   :  { %5 = vst [vmem:[%s119_s1] sm:$0xff] %v4_v0  ;;  %39 = vst [vmem:[%s119_s1 + $0x40] sm:$0xff] %v38_v1 }
   0x3   :  { %40 = vst [vmem:[%s119_s1 + $0x8] sm:$0xff] %v4_v0  ;;  %41 = vst [vmem:[%s119_s1 + $0x48] sm:$0xff] %v38_v1 }
   0x4   :  { %42 = vst [vmem:[%s119_s1 + $0x10] sm:$0xff] %v4_v0  ;;  %43 = vst [vmem:[%s119_s1 + $0x50] sm:$0xff] %v38_v1 }
   0x5   :  { %44 = vst [vmem:[%s119_s1 + $0x18] sm:$0xff] %v4_v0  ;;  %45 = vst [vmem:[%s119_s1 + $0x58] sm:$0xff] %v38_v1 }
   0x6   :  { %46 = vst [vmem:[%s119_s1 + $0x20] sm:$0xff] %v4_v0  ;;  %47 = vst [vmem:[%s119_s1 + $0x60] sm:$0xff] %v38_v1 }
   0x7   :  { %48 = vst [vmem:[%s119_s1 + $0x28] sm:$0xff] %v4_v0  ;;  %49 = vst [vmem:[%s119_s1 + $0x68] sm:$0xff] %v38_v1 }
   0x8   :  { %50 = vst [vmem:[%s119_s1 + $0x30] sm:$0xff] %v4_v0  ;;  %51 = vst [vmem:[%s119_s1 + $0x70] sm:$0xff] %v38_v1 }
   0x9   :  { %52 = vst [vmem:[%s119_s1 + $0x38] sm:$0xff] %v4_v0  ;;  %53 = vst [vmem:[%s119_s1 + $0x78] sm:$0xff] %v38_v1 }

// kernel: forward.8
= control target key start
LH: loop header
LB: loop body
LE: loop exit
PB: predicated region body
PF: predicated region fallthrough
CT: control target
= control target key end

     0   :  { %v227_v0 = vmov 0.0   ;;  %vm228_vm0 = vmmov 0   ;;  %s293_s1 = inlined_call_operand.vmem [shape: bf16[128,128], index: 1, kind: input, shape index: {}]   ;;  %s294_s0 = inlined_call_operand.vmem [shape: bf16[16,128], index: 0, kind: input, shape index: {}]   ;;  %s295_s2 = inlined_call_operand.vmem [shape: f32[1,128], index: 2, kind: input, shape index: {}]   ;;  %s296_s3 = inlined_call_operand.vmem [shape: f32[1,128], index: 3, kind: input, shape index: {}]   ;;  %s297_s4 = inlined_call_operand.vmem [shape: f32[16,128], index: 4, kind: output, shape index: {}]  }
   0x1   :  { %196 = vmatprep.subr.bf16.mxu0 %v227_v0  ;;  %v218_v1 = vld [vmem:[%s293_s1] sm:$0xff]   ;;  %212 = vmatprep.mubr.msk.bf16.mxu0 %vm228_vm0, %v227_v0  ;;  %v219_v2 = vld [vmem:[%s293_s1 + $0x8] sm:$0xff]   ;;  %v220_v3 = vld [vmem:[%s293_s1 + $0x10] sm:$0xff]  }
   0x2   :  { %197 = vmatpush3.bf16.msra.mxu0 %v218_v1  ;;  %v221_v4 = vld [vmem:[%s293_s1 + $0x18] sm:$0xff]   ;;  %v222_v5 = vld [vmem:[%s293_s1 + $0x20] sm:$0xff]   ;;  %v223_v6 = vld [vmem:[%s293_s1 + $0x28] sm:$0xff]  }
   0x3   :  { %198 = vmatprep.subr.bf16.mxu0 %v227_v0  ;;  %v224_v7 = vld [vmem:[%s293_s1 + $0x30] sm:$0xff]   ;;  %v225_v8 = vld [vmem:[%s293_s1 + $0x38] sm:$0xff]   ;;  %v226_v9 = vld [vmem:[%s294_s0] sm:$0xff]  }
   0x4   :  { %v185_v10 = vld [vmem:[%s295_s2] ss:$0 sm:$0xff] }
   0x5   :  { %v186_v12 = vld [vmem:[%s296_s3] ss:$0 sm:$0xff] }
   0x6   :  { %199 = vmatpush3.bf16.msra.mxu0 %v219_v2 }
   0x7   :  { %200 = vmatprep.subr.bf16.mxu0 %v227_v0 }
   0xa   :  { %201 = vmatpush3.bf16.msra.mxu0 %v220_v3 }
   0xb   :  { %202 = vmatprep.subr.bf16.mxu0 %v227_v0 }
   0xe   :  { %203 = vmatpush3.bf16.msra.mxu0 %v221_v4 }
   0xf   :  { %204 = vmatprep.subr.bf16.mxu0 %v227_v0 }
  0x12   :  { %205 = vmatpush3.bf16.msra.mxu0 %v222_v5 }
  0x13   :  { %206 = vmatprep.subr.bf16.mxu0 %v227_v0 }
  0x16   :  { %207 = vmatpush3.bf16.msra.mxu0 %v223_v6 }
  0x17   :  { %208 = vmatprep.subr.bf16.mxu0 %v227_v0 }
  0x1a   :  { %209 = vmatpush3.bf16.msra.mxu0 %v224_v7 }
  0x1b   :  { %210 = vmatprep.subr.bf16.mxu0 %v227_v0 }
  0x1e   :  { %211 = vmatpush3.bf16.msra.mxu0 %v225_v8 }
  0x21   :  { %213 = vmatmul.mubr.bf16.vlgmr.msra.gmra.mrb[0].mxu0 %v226_v9 }
  0xf4   :  { %v132_v11 = vpop.f32.mrb[0].mxu0 }
  0xf5   :  { %v155_v13 = vadd.f32 %v185_v10, %v132_v11  ;;  %v214_v14 = vpop.f32.mrb[1].mxu0 }
  0xf6   :  { %v135_v15 = vpop.f32.mrb[2].mxu0 }
  0xf7   :  { %vm157_vm1 = vcmp.gt.f32.partialorder %v155_v13, 0.0  ;;  %v166_v16 = vmul.f32 %v186_v12, %v155_v13  ;;  %v156_v17 = vadd.f32 %v185_v10, %v135_v15  ;;  %v215_v18 = vpop.f32.mrb[3].mxu0 }
  0xf9   :  { %v168_v19 = vsel %vm157_vm1, %v155_v13, %v166_v16  ;;  %vm158_vm2 = vcmp.gt.f32.partialorder %v156_v17, 0.0  ;;  %v167_v20 = vmul.f32 %v186_v12, %v156_v17 }
  0xfa   :  { %170 = vst [vmem:[%s297_s4] sm:$0xff] %v168_v19 }
  0xfb   :  { %v169_v21 = vsel %vm158_vm2, %v156_v17, %v167_v20 }
  0xfc   :  { %171 = vst [vmem:[%s297_s4 + $0x8] sm:$0xff] %v169_v21 }

// kernel: forward.7
= control target key start
LH: loop header
LB: loop body
LE: loop exit
PB: predicated region body
PF: predicated region fallthrough
CT: control target
= control target key end

     0   :  { %v244_v0 = vmov 0.0   ;;  %vm245_vm0 = vmmov 0   ;;  %s307_s1 = inlined_call_operand.vmem [shape: bf16[128,128], index: 1, kind: input, shape index: {}]   ;;  %s308_s0 = inlined_call_operand.vmem [shape: bf16[16,128], index: 0, kind: input, shape index: {}]   ;;  %s309_s2 = inlined_call_operand.vmem [shape: f32[1,128], index: 2, kind: input, shape index: {}]   ;;  %s310_s3 = inlined_call_operand.vmem [shape: f32[1,128], index: 3, kind: input, shape index: {}]   ;;  %s311_s4 = inlined_call_operand.vmem [shape: bf16[16,128], index: 4, kind: output, shape index: {}]  }
   0x1   :  { %213 = vmatprep.subr.bf16.mxu0 %v244_v0  ;;  %v235_v1 = vld [vmem:[%s307_s1] sm:$0xff]   ;;  %229 = vmatprep.mubr.msk.bf16.mxu0 %vm245_vm0, %v244_v0  ;;  %v236_v2 = vld [vmem:[%s307_s1 + $0x8] sm:$0xff]   ;;  %v237_v3 = vld [vmem:[%s307_s1 + $0x10] sm:$0xff]  }
   0x2   :  { %214 = vmatpush3.bf16.msra.mxu0 %v235_v1  ;;  %v238_v4 = vld [vmem:[%s307_s1 + $0x18] sm:$0xff]   ;;  %v239_v5 = vld [vmem:[%s307_s1 + $0x20] sm:$0xff]   ;;  %v240_v6 = vld [vmem:[%s307_s1 + $0x28] sm:$0xff]  }
   0x3   :  { %215 = vmatprep.subr.bf16.mxu0 %v244_v0  ;;  %v241_v7 = vld [vmem:[%s307_s1 + $0x30] sm:$0xff]   ;;  %v242_v8 = vld [vmem:[%s307_s1 + $0x38] sm:$0xff]   ;;  %v243_v9 = vld [vmem:[%s308_s0] sm:$0xff]  }
   0x4   :  { %v193_v10 = vld [vmem:[%s309_s2] ss:$0 sm:$0xff] }
   0x5   :  { %v194_v12 = vld [vmem:[%s310_s3] ss:$0 sm:$0xff] }
   0x6   :  { %216 = vmatpush3.bf16.msra.mxu0 %v236_v2 }
   0x7   :  { %217 = vmatprep.subr.bf16.mxu0 %v244_v0 }
   0xa   :  { %218 = vmatpush3.bf16.msra.mxu0 %v237_v3 }
   0xb   :  { %219 = vmatprep.subr.bf16.mxu0 %v244_v0 }
   0xe   :  { %220 = vmatpush3.bf16.msra.mxu0 %v238_v4 }
   0xf   :  { %221 = vmatprep.subr.bf16.mxu0 %v244_v0 }
  0x12   :  { %222 = vmatpush3.bf16.msra.mxu0 %v239_v5 }
  0x13   :  { %223 = vmatprep.subr.bf16.mxu0 %v244_v0 }
  0x16   :  { %224 = vmatpush3.bf16.msra.mxu0 %v240_v6 }
  0x17   :  { %225 = vmatprep.subr.bf16.mxu0 %v244_v0 }
  0x1a   :  { %226 = vmatpush3.bf16.msra.mxu0 %v241_v7 }
  0x1b   :  { %227 = vmatprep.subr.bf16.mxu0 %v244_v0 }
  0x1e   :  { %228 = vmatpush3.bf16.msra.mxu0 %v242_v8 }
  0x21   :  { %230 = vmatmul.mubr.bf16.vlgmr.msra.gmra.mrb[0].mxu0 %v243_v9 }
  0xf4   :  { %v132_v11 = vpop.f32.mrb[0].mxu0 }
  0xf5   :  { %v155_v13 = vadd.f32 %v193_v10, %v132_v11  ;;  %v231_v14 = vpop.f32.mrb[1].mxu0 }
  0xf6   :  { %v135_v15 = vpop.f32.mrb[2].mxu0 }
  0xf7   :  { %v166_v16 = vmul.f32 %v194_v12, %v155_v13  ;;  %v156_v17 = vadd.f32 %v193_v10, %v135_v15  ;;  %v232_v18 = vpop.f32.mrb[3].mxu0  ;;  %vm157_vm1 = vcmp.gt.f32.partialorder %v155_v13, 0.0 }
  0xf9   :  { %vm158_vm2 = vcmp.gt.f32.partialorder %v156_v17, 0.0  ;;  %v167_v19 = vmul.f32 %v194_v12, %v156_v17  ;;  %v168_v20 = vsel %vm157_vm1, %v155_v13, %v166_v16 }
  0xfb   :  { %v169_v21 = vsel %vm158_vm2, %v156_v17, %v167_v19 }
  0xfc   :  { %v202_v22 = vpack.c.bf16 %v169_v21, %v168_v20 }
  0xfe   :  { %203 = vst [vmem:[%s311_s4] sm:$0xff] %v202_v22  }

// kernel: forward.6
= control target key start
LH: loop header
LB: loop body
LE: loop exit
PB: predicated region body
PF: predicated region fallthrough
CT: control target
= control target key end

     0   :  { %s1289_s15 = smov 0   ;;  %s1291_s16 = smov 0   ;;  %s1460_s0 = inlined_call_operand.vmem [shape: bf16[128,384], index: 0, kind: input, shape index: {}]   ;;  %s1461_s1 = inlined_call_operand.vmem [shape: bf16[384,128], index: 1, kind: input, shape index: {}]   ;;  %s1462_s2 = inlined_call_operand.vmem [shape: f32[1,128], index: 2, kind: input, shape index: {}]   ;;  %s1463_s3 = inlined_call_operand.vmem [shape: f32[1,128], index: 3, kind: input, shape index: {}]   ;;  %s1464_s4 = inlined_call_operand.vmem [shape: bf16[128,128], index: 4, kind: output, shape index: {}]  }
   0x1   :  { %s1293_s17 = smov 0   ;;  %s1295_s18 = smov 0  }
   0x2   :  { %s1297_s19 = smov 0  }
   0x3 LB: > { %s26_s20 = sadd.s32 1, %s1257_s18  ;;  %p49_p1 = scmp.ne.s32.totalorder %s1249_s16, %s1245_s15  ;;  %s1261_s19 = sphi %s1297_s19, %s14_s19   ;;  %s1257_s18 = sphi %s1295_s18, %s1468_s18   ;;  %s1253_s17 = sphi %s1293_s17, %s1467_s17   ;;  %s1249_s16 = sphi %s1291_s16, %s1466_s16   ;;  %s1245_s15 = sphi %s1289_s15, %s1465_s15  }
   0x4   : > { %p27_p0 = scmp.ge.s32.totalorder %s26_s20, 3  ;;  %p50_p2 = scmp.eq.s32.totalorder %s1261_s19, 0 }
   0x5   : > { %s42_s22 = sadd.s32 1, %s1249_s16  ;;  %p992_p5 = scmp.ge.s32.totalorder %s1261_s19, 3 }
   0x6   : > { %s1470_s20 = smov (%p27_p0, %s26_s20), 0  ;;  %p51_p3 = por %p50_p2, %p49_p1 }
   0x7   : > { %s38_s21 = ssub.s32 %s1257_s18, %s1470_s20  ;;  %195 = sbr.rel (%p992_p5) target bundleno = 28 (0x1c), region = 24 }
   0x8   : > { %p40_p4 = scmp.eq.s32.totalorder %s38_s21, 0 }
   0xa   : > { %s1324_s23 = scalar_select %p40_p4, %s1249_s16, %s42_s22  }
   0xe   : > { %198 = sbr.rel (!%p51_p3) target bundleno = 28 (0x1c), region = 28  ;;  %s200_s24 = sand.u32 (%p51_p3), 1, %s1249_s16  }
   0xf   : > { %s994_s25 = sshll.u32 (%p51_p3), %s1257_s18, 2  ;;  %s993_s26 = sshll.u32 (%p51_p3), %s200_s24, 6 }
  0x10   : > { %s1332_s29 = scalar_lea.vmem (%p51_p3), %s1460_s0, %s994_s25  ;;  %s202_s30 = scalar_lea.vmem (%p51_p3), [#allocation3], %s993_s26 }
  0x11   : > { %v223_v0 = vld [vmem:[%s1332_s29] sm:$0xf] (%p51_p3)  ;;  %v225_v1 = vld [vmem:[%s1332_s29 + $0xc] sm:$0xf] (%p51_p3)  ;;  %v227_v2 = vld [vmem:[%s1332_s29 + $0x18] sm:$0xf] (%p51_p3) }
  0x12   : > { %224 = vst [vmem:[%s202_s30] sm:$0xf] (%p51_p3), %v223_v0  ;;  %226 = vst [vmem:[%s202_s30 + $0x4] sm:$0xf] (%p51_p3), %v225_v1  ;;  %v229_v3 = vld [vmem:[%s1332_s29 + $0x24] sm:$0xf] (%p51_p3) }
  0x13   : > { %v231_v4 = vld [vmem:[%s1332_s29 + $0x30] sm:$0xf] (%p51_p3)  ;;  %228 = vst [vmem:[%s202_s30 + $0x8] sm:$0xf] (%p51_p3), %v227_v2  ;;  %230 = vst [vmem:[%s202_s30 + $0xc] sm:$0xf] (%p51_p3), %v229_v3 }
  0x14   : > { %232 = vst [vmem:[%s202_s30 + $0x10] sm:$0xf] (%p51_p3), %v231_v4  ;;  %v233_v5 = vld [vmem:[%s1332_s29 + $0x3c] sm:$0xf] (%p51_p3)  ;;  %v235_v6 = vld [vmem:[%s1332_s29 + $0x48] sm:$0xf] (%p51_p3) }
  0x15   : > { %v237_v7 = vld [vmem:[%s1332_s29 + $0x54] sm:$0xf]  ;;  %234 = vst [vmem:[%s202_s30 + $0x14] sm:$0xf] %v233_v5  ;;  %236 = vst [vmem:[%s202_s30 + $0x18] sm:$0xf] %v235_v6 }
  0x16   : > { %238 = vst [vmem:[%s202_s30 + $0x1c] sm:$0xf] %v237_v7  ;;  %v239_v8 = vld [vmem:[%s1332_s29 + $0x60] sm:$0xf]  ;;  %v241_v9 = vld [vmem:[%s1332_s29 + $0x6c] sm:$0xf] }
  0x17   : > { %v243_v10 = vld [vmem:[%s1332_s29 + $0x78] sm:$0xf]  ;;  %240 = vst [vmem:[%s202_s30 + $0x20] sm:$0xf] %v239_v8  ;;  %242 = vst [vmem:[%s202_s30 + $0x24] sm:$0xf] %v241_v9 }
  0x18   : > { %244 = vst [vmem:[%s202_s30 + $0x28] sm:$0xf] %v243_v10  ;;  %v245_v11 = vld [vmem:[%s1332_s29 + $0x84] sm:$0xf]  ;;  %v247_v12 = vld [vmem:[%s1332_s29 + $0x90] sm:$0xf] }
  0x19   : > { %v249_v13 = vld [vmem:[%s1332_s29 + $0x9c] sm:$0xf]  ;;  %246 = vst [vmem:[%s202_s30 + $0x2c] sm:$0xf] %v245_v11  ;;  %248 = vst [vmem:[%s202_s30 + $0x30] sm:$0xf] %v247_v12 }
  0x1a   : > { %250 = vst [vmem:[%s202_s30 + $0x34] sm:$0xf] %v249_v13  ;;  %v251_v14 = vld [vmem:[%s1332_s29 + $0xa8] sm:$0xf]  ;;  %v253_v15 = vld [vmem:[%s1332_s29 + $0xb4] sm:$0xf] }
  0x1b   : > { %252 = vst [vmem:[%s202_s30 + $0x38] sm:$0xf] %v251_v14  ;;  %254 = vst [vmem:[%s202_s30 + $0x3c] sm:$0xf] %v253_v15 }
  0x1c PF: > { %p995_p6 = scmp.ge.s32.totalorder %s1261_s19, 1  ;;  %p320_p7 = scmp.lt.s32.totalorder %s1261_s19, 4 }
  0x1e   : > { %p321_p8 = pnand %p995_p6, %p320_p7 }
  0x1f   : > { %s327_s5 = sand.u32 (!%p321_p8), 1, %s1245_s15   ;;  %s997_s6 = sshll.u32 (!%p321_p8), %s1253_s17, 4 }
  0x20   : > { %324 = sbr.rel (%p321_p8) target bundleno = 329 (0x149), region = 73  ;;  %s996_s7 = sshll.u32 (!%p321_p8), %s327_s5, 6 }
  0x21   : > { %p371_p9 = scmp.lt.s32.totalorder (!%p321_p8), %s997_s6, 47  ;;  %s1359_s12 = scalar_lea.vmem (!%p321_p8), [#allocation3], %s996_s7 }
  0x22   : > { %p999_p10 = scmp.ne.s32.totalorder (!%p321_p8), %s1253_s17, 0 }
  0x27   : > { %s1472_s6 = smov (!%p371_p9, %s997_s6), 47  ;;  %398 = sbr.rel (%p999_p10) target bundleno = 49 (0x31), region = 81 }
  0x28   : > { %s998_s8 = sshll.u32 %s1472_s6, 2  ;;  %v1263_v16 = vmov (!%p999_p10), 0.0  }
  0x29   : > { %s1357_s11 = scalar_lea.vmem %s1461_s1, %s998_s8  ;;  %399 = vst [vmem:[#allocation2] sm:$0xff] (!%p999_p10), %v1263_v16  ;;  %400 = vst [vmem:[#allocation2 + $0x8] sm:$0xff] (!%p999_p10), %v1263_v16 }
  0x2a   : > { %401 = vst [vmem:[#allocation2 + $0x10] sm:$0xff] (!%p999_p10), %v1263_v16  ;;  %402 = vst [vmem:[#allocation2 + $0x18] sm:$0xff] (!%p999_p10), %v1263_v16 }
  0x2b   : > { %403 = vst [vmem:[#allocation2 + $0x20] sm:$0xff] (!%p999_p10), %v1263_v16  ;;  %404 = vst [vmem:[#allocation2 + $0x28] sm:$0xff] (!%p999_p10), %v1263_v16 }
  0x2c   : > { %405 = vst [vmem:[#allocation2 + $0x30] sm:$0xff] (!%p999_p10), %v1263_v16  ;;  %406 = vst [vmem:[#allocation2 + $0x38] sm:$0xff] (!%p999_p10), %v1263_v16 }
  0x2d   : > { %407 = vst [vmem:[#allocation2 + $0x40] sm:$0xff] (!%p999_p10), %v1263_v16  ;;  %408 = vst [vmem:[#allocation2 + $0x48] sm:$0xff] (!%p999_p10), %v1263_v16 }
  0x2e   : > { %409 = vst [vmem:[#allocation2 + $0x50] sm:$0xff] %v1263_v16  ;;  %410 = vst [vmem:[#allocation2 + $0x58] sm:$0xff] %v1263_v16 }
  0x2f   : > { %411 = vst [vmem:[#allocation2 + $0x60] sm:$0xff] %v1263_v16  ;;  %412 = vst [vmem:[#allocation2 + $0x68] sm:$0xff] %v1263_v16 }
  0x30   : > { %413 = vst [vmem:[#allocation2 + $0x70] sm:$0xff] %v1263_v16  ;;  %414 = vst [vmem:[#allocation2 + $0x78] sm:$0xff] %v1263_v16 }
  0x31 PF: > { %v1207_v17 = vld [vmem:[%s1357_s11] sm:$0xff]   ;;  %v1208_v18 = vld [vmem:[%s1357_s11 + $0x8] sm:$0xff]   ;;  %v1209_v19 = vld [vmem:[%s1357_s11 + $0x10] sm:$0xff]   ;;  %p1016_p11 = scmp.ne.s32.totalorder %s1253_s17, 2 }
  0x32   : > { %1118 = vmatprep.subr.bf16.mxu0 %v1207_v17  ;;  %1150 = vmatprep.subr.bf16.mxu1 %v1207_v17  ;;  %v1210_v20 = vld [vmem:[%s1357_s11 + $0x18] sm:$0xff]   ;;  %v1215_v21 = vld [vmem:[%s1359_s12] sm:$0xff]   ;;  %v1212_v24 = vld [vmem:[%s1357_s11 + $0x28] sm:$0xff]  }
  0x33   : > { %1119 = vmatpush3.bf16.msra.mxu0 %v1207_v17  ;;  %1158 = vmatpush3.bf16.msra.mxu1 %v1207_v17  ;;  %v1216_v22 = vld [vmem:[%s1359_s12 + $0x20] sm:$0xff]   ;;  %v1213_v25 = vld [vmem:[%s1357_s11 + $0x30] sm:$0xff]   ;;  %v1214_v26 = vld [vmem:[%s1357_s11 + $0x38] sm:$0xff]  }
  0x34   : > { %1120 = vmatprep.subr.bf16.mxu0 %v1208_v18  ;;  %1151 = vmatprep.subr.bf16.mxu1 %v1208_v18  ;;  %v1211_v23 = vld [vmem:[%s1357_s11 + $0x20] sm:$0xff]   ;;  %v1217_v27 = vld [vmem:[%s1359_s12 + $0x8] sm:$0xff]   ;;  %v1219_v29 = vld [vmem:[%s1359_s12 + $0x10] sm:$0xff]  }
  0x35   : > { %1134 = vmatprep.mubr.bf16.mxu0 %v1215_v21  ;;  %1142 = vmatprep.mubr.bf16.mxu1 %v1216_v22  ;;  %v1218_v28 = vld [vmem:[%s1359_s12 + $0x28] sm:$0xff]   ;;  %v1220_v30 = vld [vmem:[%s1359_s12 + $0x30] sm:$0xff]   ;;  %v1221_v31 = vld [vmem:[%s1359_s12 + $0x18] sm:$0xff]  }
  0x36   : > { %v1222_v32 = vld [vmem:[%s1359_s12 + $0x38] sm:$0xff]   ;;  %v417_v33 = vld [vmem:[#allocation2 + $0x10] sm:$0xff]  ;;  %v415_v35 = vld [vmem:[#allocation2] sm:$0xff] }
  0x37   : > { %1121 = vmatpush3.bf16.msra.mxu0 %v1208_v18  ;;  %1159 = vmatpush3.bf16.msra.mxu1 %v1208_v18  ;;  %v425_v34 = vld [vmem:[#allocation2 + $0x50] sm:$0xff]  ;;  %v423_v36 = vld [vmem:[#allocation2 + $0x40] sm:$0xff]  ;;  %v418_v39 = vld [vmem:[#allocation2 + $0x18] sm:$0xff] }
  0x38   : > { %1122 = vmatprep.subr.bf16.mxu0 %v1209_v19  ;;  %1152 = vmatprep.subr.bf16.mxu1 %v1209_v19  ;;  %v426_v40 = vld [vmem:[#allocation2 + $0x58] sm:$0xff]  ;;  %v416_v45 = vld [vmem:[#allocation2 + $0x8] sm:$0xff]  ;;  %v421_v57 = vld [vmem:[#allocation2 + $0x30] sm:$0xff] }
  0x39   : > { %v424_v46 = vld [vmem:[#allocation2 + $0x48] sm:$0xff]  ;;  %v429_v58 = vld [vmem:[#allocation2 + $0x70] sm:$0xff]  ;;  %v419_v59 = vld [vmem:[#allocation2 + $0x20] sm:$0xff] }
  0x3a   : > { %v427_v60 = vld [vmem:[#allocation2 + $0x60] sm:$0xff]  ;;  %v422_v63 = vld [vmem:[#allocation2 + $0x38] sm:$0xff]  ;;  %v420_v5 = vld [vmem:[#allocation2 + $0x28] sm:$0xff] }
  0x3b   : > { %1123 = vmatpush3.bf16.msra.mxu0 %v1209_v19  ;;  %1160 = vmatpush3.bf16.msra.mxu1 %v1209_v19  ;;  %v430_v0 = vld [vmem:[#allocation2 + $0x78] sm:$0xff]  ;;  %v428_v6 = vld [vmem:[#allocation2 + $0x68] sm:$0xff]  ;;  %v1382_v19 = vld [vmem:[%s1462_s2] ss:$0 sm:$0xff] (!%p1016_p11) }
  0x3c   : > { %1124 = vmatprep.subr.bf16.mxu0 %v1210_v20  ;;  %1153 = vmatprep.subr.bf16.mxu1 %v1210_v20  ;;  %v1389_v22 = vld [vmem:[%s1463_s3] ss:$0 sm:$0xff] (!%p1016_p11) }
  0x3f   : > { %1125 = vmatpush3.bf16.msra.mxu0 %v1210_v20  ;;  %1161 = vmatpush3.bf16.msra.mxu1 %v1210_v20 }
  0x40   : > { %1126 = vmatprep.subr.bf16.mxu0 %v1211_v23  ;;  %1154 = vmatprep.subr.bf16.mxu1 %v1211_v23 }
  0x43   : > { %1127 = vmatpush3.bf16.msra.mxu0 %v1211_v23  ;;  %1162 = vmatpush3.bf16.msra.mxu1 %v1211_v23 }
  0x44   : > { %1128 = vmatprep.subr.bf16.mxu0 %v1212_v24  ;;  %1155 = vmatprep.subr.bf16.mxu1 %v1212_v24 }
  0x47   : > { %1129 = vmatpush3.bf16.msra.mxu0 %v1212_v24  ;;  %1163 = vmatpush3.bf16.msra.mxu1 %v1212_v24 }
  0x48   : > { %1130 = vmatprep.subr.bf16.mxu0 %v1213_v25  ;;  %1156 = vmatprep.subr.bf16.mxu1 %v1213_v25 }
  0x4b   : > { %1131 = vmatpush3.bf16.msra.mxu0 %v1213_v25  ;;  %1164 = vmatpush3.bf16.msra.mxu1 %v1213_v25 }
  0x4c   : > { %1132 = vmatprep.subr.bf16.mxu0 %v1214_v26  ;;  %1157 = vmatprep.subr.bf16.mxu1 %v1214_v26 }
  0x4f   : > { %1133 = vmatpush3.bf16.msra.mxu0 %v1214_v26  ;;  %1165 = vmatpush3.bf16.msra.mxu1 %v1214_v26 }
  0x52   : > { %1135 = vmatmul.mubr.bf16.vlgmr.msra.gmra.mrb[0].mxu0 %v1217_v27  ;;  %1143 = vmatmul.mubr.bf16.vlgmr.msra.gmra.mrb[0].mxu1 %v1218_v28 }
  0x53   : > { %1138 = vmatprep.mubr.bf16.mxu0 %v1219_v29  ;;  %1146 = vmatprep.mubr.bf16.mxu1 %v1220_v30 }
  0x5a   : > { %1139 = vmatmul.mubr.bf16.gmra.mrb[4].mxu0 %v1221_v31  ;;  %1147 = vmatmul.mubr.bf16.gmra.mrb[4].mxu1 %v1222_v32 }
 0x125   : > { %v1136_v37 = vpop.f32.mrb[0].mxu0  ;;  %v1144_v38 = vpop.f32.mrb[0].mxu1 }
 0x126   : > { %v658_v41 = vadd.f32 %v1136_v37, %v417_v33  ;;  %v666_v42 = vadd.f32 %v1144_v38, %v425_v34  ;;  %v593_v43 = vpop.f32.mrb[1].mxu0  ;;  %v625_v44 = vpop.f32.mrb[1].mxu1 }
 0x127   : > { %v656_v47 = vadd.f32 %v593_v43, %v415_v35  ;;  %v664_v48 = vadd.f32 %v625_v44, %v423_v36  ;;  %v1137_v49 = vpop.f32.mrb[2].mxu0  ;;  %v1145_v50 = vpop.f32.mrb[2].mxu1 }
 0x128   : > { %674 = vst [vmem:[#allocation2 + $0x10] sm:$0xff] %v658_v41  ;;  %682 = vst [vmem:[#allocation2 + $0x50] sm:$0xff] %v666_v42  ;;  %v659_v51 = vadd.f32 %v1137_v49, %v418_v39  ;;  %v667_v52 = vadd.f32 %v1145_v50, %v426_v40  ;;  %v596_v53 = vpop.f32.mrb[3].mxu0  ;;  %v628_v54 = vpop.f32.mrb[3].mxu1 }
 0x129   : > { %672 = vst [vmem:[#allocation2] sm:$0xff] %v656_v47  ;;  %680 = vst [vmem:[#allocation2 + $0x40] sm:$0xff] %v664_v48  ;;  %v657_v55 = vadd.f32 %v596_v53, %v416_v45  ;;  %v665_v56 = vadd.f32 %v628_v54, %v424_v46 }
 0x12a   : > { %675 = vst [vmem:[#allocation2 + $0x18] sm:$0xff] %v659_v51  ;;  %683 = vst [vmem:[#allocation2 + $0x58] sm:$0xff] %v667_v52 }
 0x12b   : > { %673 = vst [vmem:[#allocation2 + $0x8] sm:$0xff] %v657_v55  ;;  %681 = vst [vmem:[#allocation2 + $0x48] sm:$0xff] %v665_v56 }
 0x12d   : > { %v1140_v61 = vpop.f32.mrb[4].mxu0  ;;  %v1148_v62 = vpop.f32.mrb[4].mxu1  ;;  %691 = sbr.rel (%p1016_p11) target bundleno = 329 (0x149), region = 85 }
 0x12e   : > { %v662_v1 = vadd.f32 %v1140_v61, %v421_v57  ;;  %v670_v2 = vadd.f32 %v1148_v62, %v429_v58  ;;  %v609_v3 = vpop.f32.mrb[5].mxu0  ;;  %v641_v4 = vpop.f32.mrb[5].mxu1 }
 0x12f   : > { %v660_v7 = vadd.f32 %v609_v3, %v419_v59  ;;  %v668_v8 = vadd.f32 %v641_v4, %v427_v60  ;;  %v1141_v9 = vpop.f32.mrb[6].mxu0  ;;  %v1149_v10 = vpop.f32.mrb[6].mxu1  ;;  %v694_v23 = vld [vmem:[#allocation2 + $0x10] sm:$0xff] (!%p1016_p11) }
 0x130   : > { %678 = vst [vmem:[#allocation2 + $0x30] sm:$0xff] %v662_v1  ;;  %686 = vst [vmem:[#allocation2 + $0x70] sm:$0xff] %v670_v2  ;;  %v663_v11 = vadd.f32 %v1141_v9, %v422_v63  ;;  %v671_v12 = vadd.f32 %v1149_v10, %v430_v0  ;;  %v612_v13 = vpop.f32.mrb[7].mxu0  ;;  %v644_v14 = vpop.f32.mrb[7].mxu1  ;;  %v692_v17 = vld [vmem:[#allocation2] sm:$0xff] (!%p1016_p11)  ;;  %v717_v25 = vadd.f32 (!%p1016_p11), %v1382_v19, %v694_v23  ;;  %v702_v45 = vld [vmem:[#allocation2 + $0x50] sm:$0xff] (!%p1016_p11) }
 0x131   : > { %676 = vst [vmem:[#allocation2 + $0x20] sm:$0xff] %v660_v7  ;;  %684 = vst [vmem:[#allocation2 + $0x60] sm:$0xff] %v668_v8  ;;  %v661_v15 = vadd.f32 %v612_v13, %v420_v5  ;;  %v669_v16 = vadd.f32 %v644_v14, %v428_v6  ;;  %v715_v20 = vadd.f32 (!%p1016_p11), %v1382_v19, %v692_v17  ;;  %v695_v24 = vld [vmem:[#allocation2 + $0x18] sm:$0xff] (!%p1016_p11)  ;;  %v700_v43 = vld [vmem:[#allocation2 + $0x40] sm:$0xff] (!%p1016_p11) }
 0x132   : > { %679 = vst [vmem:[#allocation2 + $0x38] sm:$0xff] %v663_v11  ;;  %687 = vst [vmem:[#allocation2 + $0x78] sm:$0xff] %v671_v12  ;;  %v693_v18 = vld [vmem:[#allocation2 + $0x8] sm:$0xff] (!%p1016_p11)  ;;  %v718_v26 = vadd.f32 (!%p1016_p11), %v1382_v19, %v695_v24  ;;  %vm733_vm2 = vcmp.gt.f32.partialorder (!%p1016_p11), %v717_v25, 0.0  ;;  %v756_v32 = vmul.f32 (!%p1016_p11), %v1389_v22, %v717_v25  ;;  %v723_v52 = vadd.f32 (!%p1016_p11), %v1382_v19, %v700_v43  ;;  %v703_v54 = vld [vmem:[#allocation2 + $0x58] sm:$0xff] (!%p1016_p11) }
 0x133   : > { %677 = vst [vmem:[#allocation2 + $0x28] sm:$0xff] %v661_v15  ;;  %685 = vst [vmem:[#allocation2 + $0x68] sm:$0xff] %v669_v16  ;;  %v716_v21 = vadd.f32 (!%p1016_p11), %v1382_v19, %v693_v18  ;;  %vm731_vm0 = vcmp.gt.f32.partialorder (!%p1016_p11), %v715_v20, 0.0  ;;  %v754_v29 = vmul.f32 (!%p1016_p11), %v1389_v22, %v715_v20  ;;  %v701_v44 = vld [vmem:[#allocation2 + $0x48] sm:$0xff] (!%p1016_p11)  ;;  %v725_v55 = vadd.f32 (!%p1016_p11), %v1382_v19, %v702_v45 }
 0x134   : > { %vm734_vm3 = vcmp.gt.f32.partialorder %v718_v26, 0.0  ;;  %v757_v33 = vmul.f32 %v1389_v22, %v718_v26  ;;  %v772_v40 = vsel %vm733_vm2, %v717_v25, %v756_v32  ;;  %v724_v53 = vadd.f32 %v1382_v19, %v701_v44 }
 0x135   : > { %vm732_vm1 = vcmp.gt.f32.partialorder %v716_v21, 0.0  ;;  %v755_v30 = vmul.f32 %v1389_v22, %v716_v21  ;;  %v770_v34 = vsel %vm731_vm0, %v715_v20, %v754_v29  ;;  %vm739_vm8 = vcmp.gt.f32.partialorder %v723_v52, 0.0 }
 0x136   : > { %v773_v41 = vsel %vm734_vm3, %v718_v26, %v757_v33  ;;  %vm740_vm9 = vcmp.gt.f32.partialorder %v724_v53, 0.0  ;;  %v762_v61 = vmul.f32 %v1389_v22, %v723_v52  ;;  %v763_v0 = vmul.f32 %v1389_v22, %v724_v53 }
 0x137   : > { %v698_v31 = vld [vmem:[#allocation2 + $0x30] sm:$0xff]  ;;  %v771_v35 = vsel %vm732_vm1, %v716_v21, %v755_v30  ;;  %v1063_v46 = vpack.c.bf16 %v773_v41, %v772_v40  ;;  %v726_v1 = vadd.f32 %v1382_v19, %v703_v54  ;;  %vm741_vm10 = vcmp.gt.f32.partialorder %v725_v55, 0.0 }
 0x138   : > { %v696_v27 = vld [vmem:[#allocation2 + $0x20] sm:$0xff]  ;;  %v1058_v39 = vpack.c.bf16 %v771_v35, %v770_v34  ;;  %v721_v42 = vadd.f32 %v1382_v19, %v698_v31  ;;  %v778_v3 = vsel %vm739_vm8, %v723_v52, %v762_v61  ;;  %v764_v4 = vmul.f32 %v1389_v22, %v725_v55  ;;  %v706_v6 = vld [vmem:[#allocation2 + $0x70] sm:$0xff] }
 0x139   : > { %v719_v36 = vadd.f32 %v1382_v19, %v696_v27  ;;  %v699_v38 = vld [vmem:[#allocation2 + $0x38] sm:$0xff]  ;;  %1095 = vst [vmem:[%s1464_s4 + $0x8] sm:$0xff] %v1063_v46   ;;  %v704_v59 = vld [vmem:[#allocation2 + $0x60] sm:$0xff]  ;;  %v779_v7 = vsel %vm740_vm9, %v724_v53, %v763_v0  ;;  %vm742_vm11 = vcmp.gt.f32.partialorder %v726_v1, 0.0  ;;  %v765_v8 = vmul.f32 %v1389_v22, %v726_v1 }
 0x13a   : > { %v697_v28 = vld [vmem:[#allocation2 + $0x28] sm:$0xff]  ;;  %1059 = vst [vmem:[%s1464_s4] sm:$0xff] %v1058_v39   ;;  %v722_v49 = vadd.f32 %v1382_v19, %v699_v38  ;;  %vm737_vm6 = vcmp.gt.f32.partialorder %v721_v42, 0.0  ;;  %v760_v50 = vmul.f32 %v1389_v22, %v721_v42  ;;  %v727_v5 = vadd.f32 %v1382_v19, %v704_v59  ;;  %v707_v10 = vld [vmem:[#allocation2 + $0x78] sm:$0xff] }
 0x13b   : > { %v720_v37 = vadd.f32 %v1382_v19, %v697_v28  ;;  %vm735_vm4 = vcmp.gt.f32.partialorder %v719_v36, 0.0  ;;  %v758_v47 = vmul.f32 %v1389_v22, %v719_v36  ;;  %v705_v62 = vld [vmem:[#allocation2 + $0x68] sm:$0xff]  ;;  %v1078_v11 = vpack.c.bf16 %v779_v7, %v778_v3 }
 0x13c   : > { %vm738_vm7 = vcmp.gt.f32.partialorder %v722_v49, 0.0  ;;  %v761_v57 = vmul.f32 %v1389_v22, %v722_v49  ;;  %v776_v58 = vsel %vm737_vm6, %v721_v42, %v760_v50  ;;  %v728_v9 = vadd.f32 %v1382_v19, %v705_v62 }
 0x13d   : > { %vm736_vm5 = vcmp.gt.f32.partialorder %v720_v37, 0.0  ;;  %v759_v48 = vmul.f32 %v1389_v22, %v720_v37  ;;  %v774_v51 = vsel %vm735_vm4, %v719_v36, %v758_v47  ;;  %v780_v12 = vsel %vm741_vm10, %v725_v55, %v764_v4  ;;  %1098 = vst [vmem:[%s1464_s4 + $0x20] sm:$0xff] %v1078_v11  }
 0x13e   : > { %v777_v63 = vsel %vm738_vm7, %v722_v49, %v761_v57  ;;  %vm743_vm12 = vcmp.gt.f32.partialorder %v727_v5, 0.0  ;;  %v766_v13 = vmul.f32 %v1389_v22, %v727_v5  ;;  %v781_v14 = vsel %vm742_vm11, %v726_v1, %v765_v8 }
 0x13f   : > { %v775_v56 = vsel %vm736_vm5, %v720_v37, %v759_v48  ;;  %v1073_v2 = vpack.c.bf16 %v777_v63, %v776_v58  ;;  %vm744_vm13 = vcmp.gt.f32.partialorder %v728_v9, 0.0  ;;  %v767_v15 = vmul.f32 %v1389_v22, %v728_v9 }
 0x140   : > { %v1068_v60 = vpack.c.bf16 %v775_v56, %v774_v51  ;;  %v729_v16 = vadd.f32 %v1382_v19, %v706_v6  ;;  %v1083_v17 = vpack.c.bf16 %v781_v14, %v780_v12  ;;  %v782_v18 = vsel %vm743_vm12, %v727_v5, %v766_v13 }
 0x141   : > { %1097 = vst [vmem:[%s1464_s4 + $0x18] sm:$0xff] %v1073_v2   ;;  %v730_v20 = vadd.f32 %v1382_v19, %v707_v10  ;;  %v783_v21 = vsel %vm744_vm13, %v728_v9, %v767_v15 }
 0x142   : > { %1096 = vst [vmem:[%s1464_s4 + $0x10] sm:$0xff] %v1068_v60   ;;  %vm745_vm14 = vcmp.gt.f32.partialorder %v729_v16, 0.0  ;;  %v768_v23 = vmul.f32 %v1389_v22, %v729_v16  ;;  %1099 = vst [vmem:[%s1464_s4 + $0x28] sm:$0xff] %v1083_v17   ;;  %v1088_v24 = vpack.c.bf16 %v783_v21, %v782_v18 }
 0x143   : > { %vm746_vm15 = vcmp.gt.f32.partialorder %v730_v20, 0.0  ;;  %v769_v25 = vmul.f32 %v1389_v22, %v730_v20 }
 0x144   : > { %v784_v26 = vsel %vm745_vm14, %v729_v16, %v768_v23  ;;  %1100 = vst [vmem:[%s1464_s4 + $0x30] sm:$0xff] %v1088_v24  }
 0x145   : > { %v785_v27 = vsel %vm746_vm15, %v730_v20, %v769_v25 }
 0x146   : > { %v1093_v28 = vpack.c.bf16 %v785_v27, %v784_v26 }
 0x148   : > { %1101 = vst [vmem:[%s1464_s4 + $0x38] sm:$0xff] %v1093_v28  }
 0x149 PF: > { %s14_s19 = sadd.s32 1, %s1261_s19   ;;  %s1465_s15 = smov %s1249_s16 }
 0x14a   : > { %p11_p12 = scmp.ge.s32.totalorder %s14_s19, 5   ;;  %s1466_s16 = smov %s1324_s23 }
 0x14b   : > { %s1467_s17 = smov %s1257_s18  ;;  %s1468_s18 = smov %s1470_s20 }
 0x14c   :  { %13 = sbr.rel (!%p11_p12) target bundleno = 3 (0x3), region = 129 }

// kernel: forward.9
= control target key start
LH: loop header
LB: loop body
LE: loop exit
PB: predicated region body
PF: predicated region fallthrough
CT: control target
= control target key end

     0   :  { %s689_s1 = inlined_call_operand.vmem [shape: bf16[128,128], index: 1, kind: input, shape index: {}]   ;;  %s690_s0 = inlined_call_operand.vmem [shape: bf16[128,128], index: 0, kind: input, shape index: {}]   ;;  %s691_s2 = inlined_call_operand.vmem [shape: f32[1,128], index: 2, kind: input, shape index: {}]   ;;  %s692_s3 = inlined_call_operand.vmem [shape: f32[1,128], index: 3, kind: input, shape index: {}]   ;;  %s693_s4 = inlined_call_operand.vmem [shape: f32[128,128], index: 4, kind: output, shape index: {}]  }
   0x1   :  { %v510_v0 = vld [vmem:[%s689_s1] sm:$0xff]   ;;  %v511_v1 = vld [vmem:[%s689_s1 + $0x8] sm:$0xff]   ;;  %v512_v2 = vld [vmem:[%s689_s1 + $0x10] sm:$0xff]  }
   0x2   :  { %462 = vmatprep.subr.bf16.mxu0 %v510_v0  ;;  %494 = vmatprep.subr.bf16.mxu1 %v510_v0  ;;  %v513_v3 = vld [vmem:[%s689_s1 + $0x18] sm:$0xff]   ;;  %v518_v4 = vld [vmem:[%s690_s0] sm:$0xff]   ;;  %v515_v7 = vld [vmem:[%s689_s1 + $0x28] sm:$0xff]  }
   0x3   :  { %463 = vmatpush3.bf16.msra.mxu0 %v510_v0  ;;  %502 = vmatpush3.bf16.msra.mxu1 %v510_v0  ;;  %v519_v5 = vld [vmem:[%s690_s0 + $0x20] sm:$0xff]   ;;  %v516_v8 = vld [vmem:[%s689_s1 + $0x30] sm:$0xff]   ;;  %v517_v9 = vld [vmem:[%s689_s1 + $0x38] sm:$0xff]  }
   0x4   :  { %464 = vmatprep.subr.bf16.mxu0 %v511_v1  ;;  %495 = vmatprep.subr.bf16.mxu1 %v511_v1  ;;  %v514_v6 = vld [vmem:[%s689_s1 + $0x20] sm:$0xff]   ;;  %v520_v10 = vld [vmem:[%s690_s0 + $0x8] sm:$0xff]   ;;  %v522_v12 = vld [vmem:[%s690_s0 + $0x10] sm:$0xff]  }
   0x5   :  { %478 = vmatprep.mubr.bf16.mxu0 %v518_v4  ;;  %486 = vmatprep.mubr.bf16.mxu1 %v519_v5  ;;  %v521_v11 = vld [vmem:[%s690_s0 + $0x28] sm:$0xff]   ;;  %v523_v13 = vld [vmem:[%s690_s0 + $0x30] sm:$0xff]   ;;  %v524_v14 = vld [vmem:[%s690_s0 + $0x18] sm:$0xff]  }
   0x6   :  { %v525_v15 = vld [vmem:[%s690_s0 + $0x38] sm:$0xff]   ;;  %v602_v16 = vld [vmem:[%s691_s2] ss:$0 sm:$0xff] }
   0x7   :  { %465 = vmatpush3.bf16.msra.mxu0 %v511_v1  ;;  %503 = vmatpush3.bf16.msra.mxu1 %v511_v1  ;;  %v607_v18 = vld [vmem:[%s692_s3] ss:$0 sm:$0xff] }
   0x8   :  { %466 = vmatprep.subr.bf16.mxu0 %v512_v2  ;;  %496 = vmatprep.subr.bf16.mxu1 %v512_v2 }
   0xb   :  { %467 = vmatpush3.bf16.msra.mxu0 %v512_v2  ;;  %504 = vmatpush3.bf16.msra.mxu1 %v512_v2 }
   0xc   :  { %468 = vmatprep.subr.bf16.mxu0 %v513_v3  ;;  %497 = vmatprep.subr.bf16.mxu1 %v513_v3 }
   0xf   :  { %469 = vmatpush3.bf16.msra.mxu0 %v513_v3  ;;  %505 = vmatpush3.bf16.msra.mxu1 %v513_v3 }
  0x10   :  { %470 = vmatprep.subr.bf16.mxu0 %v514_v6  ;;  %498 = vmatprep.subr.bf16.mxu1 %v514_v6 }
  0x13   :  { %471 = vmatpush3.bf16.msra.mxu0 %v514_v6  ;;  %506 = vmatpush3.bf16.msra.mxu1 %v514_v6 }
  0x14   :  { %472 = vmatprep.subr.bf16.mxu0 %v515_v7  ;;  %499 = vmatprep.subr.bf16.mxu1 %v515_v7 }
  0x17   :  { %473 = vmatpush3.bf16.msra.mxu0 %v515_v7  ;;  %507 = vmatpush3.bf16.msra.mxu1 %v515_v7 }
  0x18   :  { %474 = vmatprep.subr.bf16.mxu0 %v516_v8  ;;  %500 = vmatprep.subr.bf16.mxu1 %v516_v8 }
  0x1b   :  { %475 = vmatpush3.bf16.msra.mxu0 %v516_v8  ;;  %508 = vmatpush3.bf16.msra.mxu1 %v516_v8 }
  0x1c   :  { %476 = vmatprep.subr.bf16.mxu0 %v517_v9  ;;  %501 = vmatprep.subr.bf16.mxu1 %v517_v9 }
  0x1f   :  { %477 = vmatpush3.bf16.msra.mxu0 %v517_v9  ;;  %509 = vmatpush3.bf16.msra.mxu1 %v517_v9 }
  0x22   :  { %479 = vmatmul.mubr.bf16.vlgmr.msra.gmra.mrb[0].mxu0 %v520_v10  ;;  %487 = vmatmul.mubr.bf16.vlgmr.msra.gmra.mrb[0].mxu1 %v521_v11 }
  0x23   :  { %482 = vmatprep.mubr.bf16.mxu0 %v522_v12  ;;  %490 = vmatprep.mubr.bf16.mxu1 %v523_v13 }
  0x2a   :  { %483 = vmatmul.mubr.bf16.gmra.mrb[4].mxu0 %v524_v14  ;;  %491 = vmatmul.mubr.bf16.gmra.mrb[4].mxu1 %v525_v15 }
  0xf5   :  { %v480_v17 = vpop.f32.mrb[0].mxu0  ;;  %v488_v19 = vpop.f32.mrb[0].mxu1 }
  0xf6   :  { %v339_v20 = vadd.f32 %v480_v17, %v602_v16  ;;  %v347_v21 = vadd.f32 %v488_v19, %v602_v16  ;;  %v216_v22 = vpop.f32.mrb[1].mxu0  ;;  %v248_v23 = vpop.f32.mrb[1].mxu1 }
  0xf7   :  { %v337_v24 = vadd.f32 %v602_v16, %v216_v22  ;;  %v345_v25 = vadd.f32 %v602_v16, %v248_v23  ;;  %v481_v26 = vpop.f32.mrb[2].mxu0  ;;  %v489_v27 = vpop.f32.mrb[2].mxu1 }
  0xf8   :  { %vm355_vm0 = vcmp.gt.f32.partialorder %v339_v20, 0.0  ;;  %v378_v28 = vmul.f32 %v607_v18, %v339_v20  ;;  %vm363_vm1 = vcmp.gt.f32.partialorder %v347_v21, 0.0  ;;  %v386_v29 = vmul.f32 %v607_v18, %v347_v21  ;;  %v219_v30 = vpop.f32.mrb[3].mxu0  ;;  %v251_v31 = vpop.f32.mrb[3].mxu1 }
  0xf9   :  { %vm353_vm2 = vcmp.gt.f32.partialorder %v337_v24, 0.0  ;;  %v376_v32 = vmul.f32 %v607_v18, %v337_v24  ;;  %vm361_vm3 = vcmp.gt.f32.partialorder %v345_v25, 0.0  ;;  %v384_v33 = vmul.f32 %v607_v18, %v345_v25 }
  0xfa   :  { %v394_v34 = vsel %vm355_vm0, %v339_v20, %v378_v28  ;;  %v402_v35 = vsel %vm363_vm1, %v347_v21, %v386_v29  ;;  %v340_v36 = vadd.f32 %v481_v26, %v602_v16  ;;  %v348_v37 = vadd.f32 %v489_v27, %v602_v16 }
  0xfb   :  { %410 = vst [vmem:[%s693_s4 + $0x10] sm:$0xff] %v394_v34  ;;  %418 = vst [vmem:[%s693_s4 + $0x50] sm:$0xff] %v402_v35  ;;  %v392_v38 = vsel %vm353_vm2, %v337_v24, %v376_v32  ;;  %v400_v39 = vsel %vm361_vm3, %v345_v25, %v384_v33  ;;  %v338_v40 = vadd.f32 %v602_v16, %v219_v30 }
  0xfc   :  { %v346_v41 = vadd.f32 %v602_v16, %v251_v31  ;;  %408 = vst [vmem:[%s693_s4] sm:$0xff] %v392_v38  ;;  %416 = vst [vmem:[%s693_s4 + $0x40] sm:$0xff] %v400_v39  ;;  %vm356_vm4 = vcmp.gt.f32.partialorder %v340_v36, 0.0  ;;  %v379_v42 = vmul.f32 %v607_v18, %v340_v36  ;;  %vm364_vm5 = vcmp.gt.f32.partialorder %v348_v37, 0.0 }
  0xfd   :  { %v387_v43 = vmul.f32 %v607_v18, %v348_v37  ;;  %vm354_vm6 = vcmp.gt.f32.partialorder %v338_v40, 0.0  ;;  %v377_v44 = vmul.f32 %v607_v18, %v338_v40  ;;  %v484_v46 = vpop.f32.mrb[4].mxu0  ;;  %v492_v47 = vpop.f32.mrb[4].mxu1 }
  0xfe   :  { %vm362_vm7 = vcmp.gt.f32.partialorder %v346_v41, 0.0  ;;  %v385_v45 = vmul.f32 %v607_v18, %v346_v41  ;;  %v395_v48 = vsel %vm356_vm4, %v340_v36, %v379_v42  ;;  %v343_v50 = vadd.f32 %v484_v46, %v602_v16  ;;  %v232_v52 = vpop.f32.mrb[5].mxu0  ;;  %v264_v53 = vpop.f32.mrb[5].mxu1 }
  0xff   :  { %v403_v49 = vsel %vm364_vm5, %v348_v37, %v387_v43  ;;  %v351_v51 = vadd.f32 %v492_v47, %v602_v16  ;;  %411 = vst [vmem:[%s693_s4 + $0x18] sm:$0xff] %v395_v48  ;;  %v393_v54 = vsel %vm354_vm6, %v338_v40, %v377_v44  ;;  %v341_v56 = vadd.f32 %v602_v16, %v232_v52  ;;  %v485_v58 = vpop.f32.mrb[6].mxu0  ;;  %v493_v59 = vpop.f32.mrb[6].mxu1 }
 0x100   :  { %419 = vst [vmem:[%s693_s4 + $0x58] sm:$0xff] %v403_v49  ;;  %v401_v55 = vsel %vm362_vm7, %v346_v41, %v385_v45  ;;  %v349_v57 = vadd.f32 %v602_v16, %v264_v53  ;;  %409 = vst [vmem:[%s693_s4 + $0x8] sm:$0xff] %v393_v54  ;;  %vm359_vm8 = vcmp.gt.f32.partialorder %v343_v50, 0.0  ;;  %v382_v60 = vmul.f32 %v607_v18, %v343_v50  ;;  %v235_v62 = vpop.f32.mrb[7].mxu0  ;;  %v267_v63 = vpop.f32.mrb[7].mxu1 }
 0x101   :  { %417 = vst [vmem:[%s693_s4 + $0x48] sm:$0xff] %v401_v55  ;;  %vm367_vm9 = vcmp.gt.f32.partialorder %v351_v51, 0.0  ;;  %v390_v61 = vmul.f32 %v607_v18, %v351_v51  ;;  %vm357_vm10 = vcmp.gt.f32.partialorder %v341_v56, 0.0  ;;  %v380_v0 = vmul.f32 %v607_v18, %v341_v56 }
 0x102   :  { %vm365_vm11 = vcmp.gt.f32.partialorder %v349_v57, 0.0  ;;  %v388_v1 = vmul.f32 %v607_v18, %v349_v57  ;;  %v398_v2 = vsel %vm359_vm8, %v343_v50, %v382_v60  ;;  %v344_v4 = vadd.f32 %v485_v58, %v602_v16 }
 0x103   :  { %v406_v3 = vsel %vm367_vm9, %v351_v51, %v390_v61  ;;  %v352_v5 = vadd.f32 %v493_v59, %v602_v16  ;;  %414 = vst [vmem:[%s693_s4 + $0x30] sm:$0xff] %v398_v2  ;;  %v396_v6 = vsel %vm357_vm10, %v341_v56, %v380_v0  ;;  %v342_v8 = vadd.f32 %v602_v16, %v235_v62 }
 0x104   :  { %422 = vst [vmem:[%s693_s4 + $0x70] sm:$0xff] %v406_v3  ;;  %v404_v7 = vsel %vm365_vm11, %v349_v57, %v388_v1  ;;  %v350_v9 = vadd.f32 %v602_v16, %v267_v63  ;;  %412 = vst [vmem:[%s693_s4 + $0x20] sm:$0xff] %v396_v6  ;;  %vm360_vm12 = vcmp.gt.f32.partialorder %v344_v4, 0.0  ;;  %v383_v10 = vmul.f32 %v607_v18, %v344_v4 }
 0x105   :  { %420 = vst [vmem:[%s693_s4 + $0x60] sm:$0xff] %v404_v7  ;;  %vm368_vm13 = vcmp.gt.f32.partialorder %v352_v5, 0.0  ;;  %v391_v11 = vmul.f32 %v607_v18, %v352_v5  ;;  %vm358_vm14 = vcmp.gt.f32.partialorder %v342_v8, 0.0  ;;  %v381_v12 = vmul.f32 %v607_v18, %v342_v8 }
 0x106   :  { %vm366_vm15 = vcmp.gt.f32.partialorder %v350_v9, 0.0  ;;  %v389_v13 = vmul.f32 %v607_v18, %v350_v9  ;;  %v399_v14 = vsel %vm360_vm12, %v344_v4, %v383_v10 }
 0x107   :  { %v407_v15 = vsel %vm368_vm13, %v352_v5, %v391_v11  ;;  %415 = vst [vmem:[%s693_s4 + $0x38] sm:$0xff] %v399_v14  ;;  %v397_v16 = vsel %vm358_vm14, %v342_v8, %v381_v12 }
 0x108   :  { %423 = vst [vmem:[%s693_s4 + $0x78] sm:$0xff] %v407_v15  ;;  %v405_v17 = vsel %vm366_vm15, %v350_v9, %v389_v13  ;;  %413 = vst [vmem:[%s693_s4 + $0x28] sm:$0xff] %v397_v16 }
 0x109   :  { %421 = vst [vmem:[%s693_s4 + $0x68] sm:$0xff] %v405_v17 }

</bundles_post_ra>
